<compile_context>
chip_gen: v7x
topology: tpu7x:2x2x1
jax: 0.10.0
libtpu: 0.0.40
codegen_flags: <defaults>
</compile_context>

<pallas_src>
import functools

import jax
import jax.numpy as jnp
from jax.experimental import pallas as pl
from jax.experimental.pallas import tpu as pltpu


def _round_up(x, m):
    return (x + m - 1) // m * m


# ---------------------------------------------------------------------------
# Phase 1: LSTM recurrence. Single invocation, everything VMEM-resident.
# ---------------------------------------------------------------------------
def _lstm_kernel(xs_ref, w_ref, hs_ref):
    """xs_ref: (T, Bp, Hp) f32 time-major inputs (xs[0] == padded fc_feats)
    w_ref : (2Hp, 4Hp) bf16 fused [W_ih^T ; W_hh^T], gate-major 128-aligned columns
    hs_ref: (T, Bp, Hp) f32 hidden state per step (output)
    """
    n_steps, _, hp = xs_ref.shape
    w = w_ref[...]

    # init_hidden: h0 = c0 = fc_feats (== xs[0]); kept in f32 vregs for accuracy.
    h = xs_ref[0]
    c = h

    # The recurrence is inherently serial, so there is nothing to pipeline across a
    # grid; a fully-unrolled static loop avoids the ~0.35us/step grid overhead.
    for t in range(n_steps):
        xh = jnp.concatenate([xs_ref[t], h], axis=-1).astype(jnp.bfloat16)  # (Bp, 2Hp)
        gates = jnp.dot(xh, w, preferred_element_type=jnp.float32)          # (Bp, 4Hp)
        i_g = jax.nn.sigmoid(gates[:, 0 * hp:1 * hp])   # 128-aligned slices -> no XLU
        f_g = jax.nn.sigmoid(gates[:, 1 * hp:2 * hp])
        g_g = jnp.tanh(gates[:, 2 * hp:3 * hp])
        o_g = jax.nn.sigmoid(gates[:, 3 * hp:4 * hp])
        c = f_g * c + i_g * g_g                         # f32 cell state
        h = o_g * jnp.tanh(c)
        hs_ref[t] = h                                   # full (Bp, Hp) tile store


# ---------------------------------------------------------------------------
# Phase 2: logits + log_softmax, batched over all (T*Bp) rows. No recurrence.
# ---------------------------------------------------------------------------
def _logit_kernel(h_ref, w_ref, b_ref, o_ref, *, valid_v):
    """h_ref: (RT, Hp) f32   row tile of hidden states
    w_ref: (Hp, Vp) bf16  padded W_logit^T
    b_ref: (1, Vp)  f32   padded bias
    o_ref: (RT, Vp) f32   log-probs (padded vocab lanes hold junk; sliced off outside)
    """
    h = h_ref[...].astype(jnp.bfloat16)
    logits = jnp.dot(h, w_ref[...], preferred_element_type=jnp.float32) + b_ref[...]
    # Mask padded vocab lanes so they don't perturb the max / sum.
    col = jax.lax.broadcasted_iota(jnp.int32, logits.shape, 1)
    logits = jnp.where(col < valid_v, logits, jnp.float32(-1e30))
    m = jnp.max(logits, axis=-1, keepdims=True)
    s = logits - m
    lse = jnp.log(jnp.sum(jnp.exp(s), axis=-1, keepdims=True))
    o_ref[...] = s - lse


def show_tell_forward(fc_feats, seq, params, *, seq_length):
    fc_feats = jnp.asarray(fc_feats, jnp.float32)
    B, H = fc_feats.shape
    E = params["embed"]        # (V+1, H)
    W_ih = params["w_ih"]      # (4H, H)   torch weight_ih_l0 layout, gates i,f,g,o
    W_hh = params["w_hh"]      # (4H, H)
    W_log = params["w_logit"]  # (V+1, H)
    b_log = params["b_logit"]  # (V+1,)
    V1 = E.shape[0]
    T = seq_length + 2

    Bp = _round_up(B, 8)       # sublane multiple
    Hp = _round_up(H, 128)     # lane multiple -> aligned gate slices
    Vp = _round_up(V1, 128)    # lane-dense output stores

    # ---- glue (plain JAX): embedding gathers + padding ----------------------------
    E_p = jnp.pad(E.astype(jnp.float32), ((0, 0), (0, Hp - H)))          # (V1, Hp)
    x0 = jnp.pad(fc_feats, ((0, Bp - B), (0, Hp - H)))                   # t = 0
    x1 = jnp.broadcast_to(E_p[0][None, :], (Bp, Hp))                     # t = 1: embed(0)
    x_tok = jnp.transpose(E_p[seq], (1, 0, 2))                           # (L, B, Hp)
    x_tok = jnp.pad(x_tok, ((0, 0), (0, Bp - B), (0, 0)))
    xs = jnp.concatenate([x0[None], x1[None], x_tok], axis=0)            # (T, Bp, Hp) f32

    # ---- fused + padded gate weight: [x | h] @ w_cat, per-gate columns 128-aligned --
    def pad_gate(w):  # (H, H) -> (Hp, Hp)
        return jnp.pad(w, ((0, Hp - H), (0, Hp - H)))

    w_x = jnp.concatenate([pad_gate(W_ih[j * H:(j + 1) * H, :].T) for j in range(4)], axis=1)
    w_h = jnp.concatenate([pad_gate(W_hh[j * H:(j + 1) * H, :].T) for j in range(4)], axis=1)
    w_cat = jnp.concatenate([w_x, w_h], axis=0).astype(jnp.bfloat16)     # (2Hp, 4Hp)

    w_log_p = jnp.pad(W_log.T, ((0, Hp - H), (0, Vp - V1))).astype(jnp.bfloat16)   # (Hp, Vp)
    b_log_p = jnp.pad(b_log.reshape(1, V1), ((0, 0), (0, Vp - V1))).astype(jnp.float32)

    # ---- phase 1: recurrent LSTM (no grid, fully resident) ------------------------
    hs = pl.pallas_call(
        _lstm_kernel,
        out_shape=jax.ShapeDtypeStruct((T, Bp, Hp), jnp.float32),
        in_specs=[
            pl.BlockSpec(memory_space=pltpu.MemorySpace.VMEM),   # xs
            pl.BlockSpec(memory_space=pltpu.MemorySpace.VMEM),   # fused gate weight
        ],
        out_specs=pl.BlockSpec(memory_space=pltpu.MemorySpace.VMEM),
    )(xs, w_cat)

    # ---- phase 2: batched logits + log_softmax, parallel over row tiles -----------
    R = T * Bp
    hs_flat = hs.reshape(R, Hp)
    RT = min(R, 256)                         # R is a multiple of 8 (Bp is)
    n_tiles = pl.cdiv(R, RT)
    Rp = n_tiles * RT
    if Rp != R:
        hs_flat = jnp.pad(hs_flat, ((0, Rp - R), (0, 0)))

    logp = pl.pallas_call(
        functools.partial(_logit_kernel, valid_v=V1),
        out_shape=jax.ShapeDtypeStruct((Rp, Vp), jnp.float32),
        grid=(n_tiles,),
        in_specs=[
            pl.BlockSpec((RT, Hp), lambda i: (i, 0)),   # hidden-state rows
            pl.BlockSpec((Hp, Vp), lambda i: (0, 0)),   # W_logit^T (grid-invariant)
            pl.BlockSpec((1, Vp), lambda i: (0, 0)),    # bias
        ],
        out_specs=pl.BlockSpec((RT, Vp), lambda i: (i, 0)),
        compiler_params=pltpu.CompilerParams(
            dimension_semantics=("parallel",)),          # non-recurrent -> megacore OK
    )(hs_flat, w_log_p, b_log_p)

    # (T*Bp, Vp) -> (B, T, V+1). Only the small valid slice is transposed; at
    # production vocab sizes, keep the time-major layout (or have the kernel write
    # batch-major) so the full log-prob tensor does not take an extra HBM round trip.
    out = logp[:R].reshape(T, Bp, Vp)[:, :B, :V1]
    return jnp.transpose(out, (1, 0, 2))


# ---------------------------------------------------------------------------
# Pure-JAX reference of the torch forward (no early break).
# ---------------------------------------------------------------------------
def show_tell_reference(fc_feats, seq, params, *, seq_length, mxu_dtype=jnp.float32):
    """mxu_dtype=jnp.bfloat16 mirrors the kernel's bf16 MXU inputs (f32 accumulate),
    isolating kernel correctness from the deliberate mixed-precision choice."""
    B, H = fc_feats.shape
    E, W_ih, W_hh = params["embed"], params["w_ih"], params["w_hh"]
    W_log, b_log = params["w_logit"], params["b_logit"]

    def mm(a, b):
        return jnp.dot(a.astype(mxu_dtype), b.astype(mxu_dtype),
                       preferred_element_type=jnp.float32)

    h = fc_feats
    c = fc_feats
    xs = [fc_feats, jnp.broadcast_to(E[0][None, :], (B, H))] \
         + [E[seq[:, j]] for j in range(seq_length)]
    outs = []
    for x in xs:
        gates = mm(x, W_ih.T) + mm(h, W_hh.T)
        i_g = jax.nn.sigmoid(gates[:, 0 * H:1 * H])
        f_g = jax.nn.sigmoid(gates[:, 1 * H:2 * H])
        g_g = jnp.tanh(gates[:, 2 * H:3 * H])
        o_g = jax.nn.sigmoid(gates[:, 3 * H:4 * H])
        c = f_g * c + i_g * g_g
        h = o_g * jnp.tanh(c)
        logits = mm(h, W_log.T) + b_log
        outs.append(jax.nn.log_softmax(logits, axis=-1))
    return jnp.stack(outs, axis=1)


def init_params(key, vocab_size, H):
    V1 = vocab_size + 1
    ks = jax.random.split(key, 5)
    s = 0.1
    return dict(
        embed=s * jax.random.normal(ks[0], (V1, H), jnp.float32),
        w_ih=s * jax.random.normal(ks[1], (4 * H, H), jnp.float32),
        w_hh=s * jax.random.normal(ks[2], (4 * H, H), jnp.float32),
        w_logit=s * jax.random.normal(ks[3], (V1, H), jnp.float32),
        b_logit=s * jax.random.normal(ks[4], (V1,), jnp.float32),
    )


if __name__ == "__main__":
    B = 2
    H = 32            # input_encoding_size == rnn_size == fc_feat_size
    vocab_size = 30   # logits over vocab_size + 1 = 31
    seq_length = 8    # loop runs seq_length + 2 = 10 steps

    key = jax.random.PRNGKey(0)
    k1, k2, k3 = jax.random.split(key, 3)
    fc_feats = jax.random.normal(k1, (B, H), dtype=jnp.float32)
    # tokens in [1, vocab_size] so the torch early-break never triggers
    seq = jax.random.randint(k2, (B, seq_length), 1, vocab_size + 1, dtype=jnp.int32)
    params = init_params(k3, vocab_size, H)

    out = show_tell_forward(fc_feats, seq, params, seq_length=seq_length)
    out = jax.block_until_ready(out)
    assert out.shape == (B, seq_length + 2, vocab_size + 1)

    # Tight check vs a reference that mirrors the kernel's bf16 MXU inputs.
    ref_bf16 = show_tell_reference(fc_feats, seq, params, seq_length=seq_length,
                                   mxu_dtype=jnp.bfloat16)
    assert jnp.allclose(out, ref_bf16, rtol=5e-3, atol=5e-3), "mismatch vs bf16-matched ref"

    # Looser sanity check vs the full-f32 module semantics.
    ref_f32 = show_tell_reference(fc_feats, seq, params, seq_length=seq_length,
                                  mxu_dtype=jnp.float32)
    assert jnp.allclose(out, ref_f32, rtol=0.0, atol=7.5e-2), "mismatch vs f32 ref"

    print("KERNEL_OK")
</pallas_src>

<mosaic_0001>
module attributes {stable_mosaic.version = 11 : i64} {
  func.func @_lstm_kernel(%arg0: memref<10x8x128xf32, #tpu.memory_space<vmem>>, %arg1: memref<256x512xbf16, #tpu.memory_space<vmem>>, %arg2: memref<10x8x128xf32, #tpu.memory_space<vmem>>) attributes {dimension_semantics = [], scalar_prefetch = 0 : i64, scratch_operands = 0 : i64, tpu.core_type = #tpu.core_type<tc>} {
    %c0 = arith.constant 0 : index
    %c0_0 = arith.constant 0 : index
    %0 = vector.load %arg1[%c0, %c0_0] : memref<256x512xbf16, #tpu.memory_space<vmem>>, vector<256x512xbf16>
    %c0_1 = arith.constant 0 : index
    %c0_2 = arith.constant 0 : index
    %c0_3 = arith.constant 0 : index
    %1 = vector.load %arg0[%c0_1, %c0_2, %c0_3] : memref<10x8x128xf32, #tpu.memory_space<vmem>>, vector<1x8x128xf32>
    %2 = vector.shape_cast %1 : vector<1x8x128xf32> to vector<8x128xf32>
    %c0_4 = arith.constant 0 : index
    %c0_5 = arith.constant 0 : index
    %c0_6 = arith.constant 0 : index
    %3 = vector.load %arg0[%c0_4, %c0_5, %c0_6] : memref<10x8x128xf32, #tpu.memory_space<vmem>>, vector<1x8x128xf32>
    %4 = vector.shape_cast %3 : vector<1x8x128xf32> to vector<8x128xf32>
    %5 = tpu.concatenate %4, %2 in 1 : vector<8x128xf32>, vector<8x128xf32> -> vector<8x256xf32>
    %6 = arith.truncf %5 : vector<8x256xf32> to vector<8x256xbf16>
    %cst = arith.constant dense<0.000000e+00> : vector<8x512xf32>
    %7 = tpu.matmul %6, %0, %cst {dimension_numbers = #tpu.dot_dimension_numbers<[1], [0], [0], [1], [0, 0, 1, 1], [], []>} : vector<8x256xbf16>, vector<256x512xbf16>, vector<8x512xf32> -> vector<8x512xf32>
    %8 = vector.extract_strided_slice %7 {offsets = [0, 0], sizes = [8, 128], strides = [1, 1]} : vector<8x512xf32> to vector<8x128xf32>
    %9 = arith.negf %8 : vector<8x128xf32>
    %10 = math.exp %9 : vector<8x128xf32>
    %cst_7 = arith.constant 1.000000e+00 : f32
    %11 = vector.broadcast %cst_7 : f32 to vector<8x128xf32>
    %12 = arith.addf %11, %10 : vector<8x128xf32>
    %13 = arith.divf %11, %12 : vector<8x128xf32>
    %14 = vector.extract_strided_slice %7 {offsets = [0, 128], sizes = [8, 128], strides = [1, 1]} : vector<8x512xf32> to vector<8x128xf32>
    %15 = arith.negf %14 : vector<8x128xf32>
    %16 = math.exp %15 : vector<8x128xf32>
    %cst_8 = arith.constant 1.000000e+00 : f32
    %17 = vector.broadcast %cst_8 : f32 to vector<8x128xf32>
    %18 = arith.addf %17, %16 : vector<8x128xf32>
    %19 = arith.divf %17, %18 : vector<8x128xf32>
    %20 = vector.extract_strided_slice %7 {offsets = [0, 256], sizes = [8, 128], strides = [1, 1]} : vector<8x512xf32> to vector<8x128xf32>
    %21 = math.tanh %20 : vector<8x128xf32>
    %22 = vector.extract_strided_slice %7 {offsets = [0, 384], sizes = [8, 128], strides = [1, 1]} : vector<8x512xf32> to vector<8x128xf32>
    %23 = arith.negf %22 : vector<8x128xf32>
    %24 = math.exp %23 : vector<8x128xf32>
    %cst_9 = arith.constant 1.000000e+00 : f32
    %25 = vector.broadcast %cst_9 : f32 to vector<8x128xf32>
    %26 = arith.addf %25, %24 : vector<8x128xf32>
    %27 = arith.divf %25, %26 : vector<8x128xf32>
    %28 = arith.mulf %19, %2 : vector<8x128xf32>
    %29 = arith.mulf %13, %21 : vector<8x128xf32>
    %30 = arith.addf %28, %29 : vector<8x128xf32>
    %31 = math.tanh %30 : vector<8x128xf32>
    %32 = arith.mulf %27, %31 : vector<8x128xf32>
    %c0_10 = arith.constant 0 : index
    %c0_11 = arith.constant 0 : index
    %c0_12 = arith.constant 0 : index
    %33 = vector.load %arg2[%c0_10, %c0_11, %c0_12] : memref<10x8x128xf32, #tpu.memory_space<vmem>>, vector<1x8x128xf32>
    %34 = vector.shape_cast %33 : vector<1x8x128xf32> to vector<8x128xf32>
    %35 = vector.shape_cast %32 : vector<8x128xf32> to vector<1x8x128xf32>
    tpu.vector_store %arg2[%c0_10, %c0_11, %c0_12], %35 {strides = array<i32>} : memref<10x8x128xf32, #tpu.memory_space<vmem>>, vector<1x8x128xf32>,
    %c1 = arith.constant 1 : index
    %c0_13 = arith.constant 0 : index
    %c0_14 = arith.constant 0 : index
    %36 = vector.load %arg0[%c1, %c0_13, %c0_14] : memref<10x8x128xf32, #tpu.memory_space<vmem>>, vector<1x8x128xf32>
    %37 = vector.shape_cast %36 : vector<1x8x128xf32> to vector<8x128xf32>
    %38 = tpu.concatenate %37, %32 in 1 : vector<8x128xf32>, vector<8x128xf32> -> vector<8x256xf32>
    %39 = arith.truncf %38 : vector<8x256xf32> to vector<8x256xbf16>
    %cst_15 = arith.constant dense<0.000000e+00> : vector<8x512xf32>
    %40 = tpu.matmul %39, %0, %cst_15 {dimension_numbers = #tpu.dot_dimension_numbers<[1], [0], [0], [1], [0, 0, 1, 1], [], []>} : vector<8x256xbf16>, vector<256x512xbf16>, vector<8x512xf32> -> vector<8x512xf32>
    %41 = vector.extract_strided_slice %40 {offsets = [0, 0], sizes = [8, 128], strides = [1, 1]} : vector<8x512xf32> to vector<8x128xf32>
    %42 = arith.negf %41 : vector<8x128xf32>
    %43 = math.exp %42 : vector<8x128xf32>
    %cst_16 = arith.constant 1.000000e+00 : f32
    %44 = vector.broadcast %cst_16 : f32 to vector<8x128xf32>
    %45 = arith.addf %44, %43 : vector<8x128xf32>
    %46 = arith.divf %44, %45 : vector<8x128xf32>
    %47 = vector.extract_strided_slice %40 {offsets = [0, 128], sizes = [8, 128], strides = [1, 1]} : vector<8x512xf32> to vector<8x128xf32>
    %48 = arith.negf %47 : vector<8x128xf32>
    %49 = math.exp %48 : vector<8x128xf32>
    %cst_17 = arith.constant 1.000000e+00 : f32
    %50 = vector.broadcast %cst_17 : f32 to vector<8x128xf32>
    %51 = arith.addf %50, %49 : vector<8x128xf32>
    %52 = arith.divf %50, %51 : vector<8x128xf32>
    %53 = vector.extract_strided_slice %40 {offsets = [0, 256], sizes = [8, 128], strides = [1, 1]} : vector<8x512xf32> to vector<8x128xf32>
    %54 = math.tanh %53 : vector<8x128xf32>
    %55 = vector.extract_strided_slice %40 {offsets = [0, 384], sizes = [8, 128], strides = [1, 1]} : vector<8x512xf32> to vector<8x128xf32>
    %56 = arith.negf %55 : vector<8x128xf32>
    %57 = math.exp %56 : vector<8x128xf32>
    %cst_18 = arith.constant 1.000000e+00 : f32
    %58 = vector.broadcast %cst_18 : f32 to vector<8x128xf32>
    %59 = arith.addf %58, %57 : vector<8x128xf32>
    %60 = arith.divf %58, %59 : vector<8x128xf32>
    %61 = arith.mulf %52, %30 : vector<8x128xf32>
    %62 = arith.mulf %46, %54 : vector<8x128xf32>
    %63 = arith.addf %61, %62 : vector<8x128xf32>
    %64 = math.tanh %63 : vector<8x128xf32>
    %65 = arith.mulf %60, %64 : vector<8x128xf32>
    %c1_19 = arith.constant 1 : index
    %c0_20 = arith.constant 0 : index
    %c0_21 = arith.constant 0 : index
    %66 = vector.load %arg2[%c1_19, %c0_20, %c0_21] : memref<10x8x128xf32, #tpu.memory_space<vmem>>, vector<1x8x128xf32>
    %67 = vector.shape_cast %66 : vector<1x8x128xf32> to vector<8x128xf32>
    %68 = vector.shape_cast %65 : vector<8x128xf32> to vector<1x8x128xf32>
    tpu.vector_store %arg2[%c1_19, %c0_20, %c0_21], %68 {strides = array<i32>} : memref<10x8x128xf32, #tpu.memory_space<vmem>>, vector<1x8x128xf32>,
    %c2 = arith.constant 2 : index
    %c0_22 = arith.constant 0 : index
    %c0_23 = arith.constant 0 : index
    %69 = vector.load %arg0[%c2, %c0_22, %c0_23] : memref<10x8x128xf32, #tpu.memory_space<vmem>>, vector<1x8x128xf32>
    %70 = vector.shape_cast %69 : vector<1x8x128xf32> to vector<8x128xf32>
    %71 = tpu.concatenate %70, %65 in 1 : vector<8x128xf32>, vector<8x128xf32> -> vector<8x256xf32>
    %72 = arith.truncf %71 : vector<8x256xf32> to vector<8x256xbf16>
    %cst_24 = arith.constant dense<0.000000e+00> : vector<8x512xf32>
    %73 = tpu.matmul %72, %0, %cst_24 {dimension_numbers = #tpu.dot_dimension_numbers<[1], [0], [0], [1], [0, 0, 1, 1], [], []>} : vector<8x256xbf16>, vector<256x512xbf16>, vector<8x512xf32> -> vector<8x512xf32>
    %74 = vector.extract_strided_slice %73 {offsets = [0, 0], sizes = [8, 128], strides = [1, 1]} : vector<8x512xf32> to vector<8x128xf32>
    %75 = arith.negf %74 : vector<8x128xf32>
    %76 = math.exp %75 : vector<8x128xf32>
    %cst_25 = arith.constant 1.000000e+00 : f32
    %77 = vector.broadcast %cst_25 : f32 to vector<8x128xf32>
    %78 = arith.addf %77, %76 : vector<8x128xf32>
    %79 = arith.divf %77, %78 : vector<8x128xf32>
    %80 = vector.extract_strided_slice %73 {offsets = [0, 128], sizes = [8, 128], strides = [1, 1]} : vector<8x512xf32> to vector<8x128xf32>
    %81 = arith.negf %80 : vector<8x128xf32>
    %82 = math.exp %81 : vector<8x128xf32>
    %cst_26 = arith.constant 1.000000e+00 : f32
    %83 = vector.broadcast %cst_26 : f32 to vector<8x128xf32>
    %84 = arith.addf %83, %82 : vector<8x128xf32>
    %85 = arith.divf %83, %84 : vector<8x128xf32>
    %86 = vector.extract_strided_slice %73 {offsets = [0, 256], sizes = [8, 128], strides = [1, 1]} : vector<8x512xf32> to vector<8x128xf32>
    %87 = math.tanh %86 : vector<8x128xf32>
    %88 = vector.extract_strided_slice %73 {offsets = [0, 384], sizes = [8, 128], strides = [1, 1]} : vector<8x512xf32> to vector<8x128xf32>
    %89 = arith.negf %88 : vector<8x128xf32>
    %90 = math.exp %89 : vector<8x128xf32>
    %cst_27 = arith.constant 1.000000e+00 : f32
    %91 = vector.broadcast %cst_27 : f32 to vector<8x128xf32>
    %92 = arith.addf %91, %90 : vector<8x128xf32>
    %93 = arith.divf %91, %92 : vector<8x128xf32>
    %94 = arith.mulf %85, %63 : vector<8x128xf32>
    %95 = arith.mulf %79, %87 : vector<8x128xf32>
    %96 = arith.addf %94, %95 : vector<8x128xf32>
    %97 = math.tanh %96 : vector<8x128xf32>
    %98 = arith.mulf %93, %97 : vector<8x128xf32>
    %c2_28 = arith.constant 2 : index
    %c0_29 = arith.constant 0 : index
    %c0_30 = arith.constant 0 : index
    %99 = vector.load %arg2[%c2_28, %c0_29, %c0_30] : memref<10x8x128xf32, #tpu.memory_space<vmem>>, vector<1x8x128xf32>
    %100 = vector.shape_cast %99 : vector<1x8x128xf32> to vector<8x128xf32>
    %101 = vector.shape_cast %98 : vector<8x128xf32> to vector<1x8x128xf32>
    tpu.vector_store %arg2[%c2_28, %c0_29, %c0_30], %101 {strides = array<i32>} : memref<10x8x128xf32, #tpu.memory_space<vmem>>, vector<1x8x128xf32>,
    %c3 = arith.constant 3 : index
    %c0_31 = arith.constant 0 : index
    %c0_32 = arith.constant 0 : index
    %102 = vector.load %arg0[%c3, %c0_31, %c0_32] : memref<10x8x128xf32, #tpu.memory_space<vmem>>, vector<1x8x128xf32>
    %103 = vector.shape_cast %102 : vector<1x8x128xf32> to vector<8x128xf32>
    %104 = tpu.concatenate %103, %98 in 1 : vector<8x128xf32>, vector<8x128xf32> -> vector<8x256xf32>
    %105 = arith.truncf %104 : vector<8x256xf32> to vector<8x256xbf16>
    %cst_33 = arith.constant dense<0.000000e+00> : vector<8x512xf32>
    %106 = tpu.matmul %105, %0, %cst_33 {dimension_numbers = #tpu.dot_dimension_numbers<[1], [0], [0], [1], [0, 0, 1, 1], [], []>} : vector<8x256xbf16>, vector<256x512xbf16>, vector<8x512xf32> -> vector<8x512xf32>
    %107 = vector.extract_strided_slice %106 {offsets = [0, 0], sizes = [8, 128], strides = [1, 1]} : vector<8x512xf32> to vector<8x128xf32>
    %108 = arith.negf %107 : vector<8x128xf32>
    %109 = math.exp %108 : vector<8x128xf32>
    %cst_34 = arith.constant 1.000000e+00 : f32
    %110 = vector.broadcast %cst_34 : f32 to vector<8x128xf32>
    %111 = arith.addf %110, %109 : vector<8x128xf32>
    %112 = arith.divf %110, %111 : vector<8x128xf32>
    %113 = vector.extract_strided_slice %106 {offsets = [0, 128], sizes = [8, 128], strides = [1, 1]} : vector<8x512xf32> to vector<8x128xf32>
    %114 = arith.negf %113 : vector<8x128xf32>
    %115 = math.exp %114 : vector<8x128xf32>
    %cst_35 = arith.constant 1.000000e+00 : f32
    %116 = vector.broadcast %cst_35 : f32 to vector<8x128xf32>
    %117 = arith.addf %116, %115 : vector<8x128xf32>
    %118 = arith.divf %116, %117 : vector<8x128xf32>
    %119 = vector.extract_strided_slice %106 {offsets = [0, 256], sizes = [8, 128], strides = [1, 1]} : vector<8x512xf32> to vector<8x128xf32>
    %120 = math.tanh %119 : vector<8x128xf32>
    %121 = vector.extract_strided_slice %106 {offsets = [0, 384], sizes = [8, 128], strides = [1, 1]} : vector<8x512xf32> to vector<8x128xf32>
    %122 = arith.negf %121 : vector<8x128xf32>
    %123 = math.exp %122 : vector<8x128xf32>
    %cst_36 = arith.constant 1.000000e+00 : f32
    %124 = vector.broadcast %cst_36 : f32 to vector<8x128xf32>
    %125 = arith.addf %124, %123 : vector<8x128xf32>
    %126 = arith.divf %124, %125 : vector<8x128xf32>
    %127 = arith.mulf %118, %96 : vector<8x128xf32>
    %128 = arith.mulf %112, %120 : vector<8x128xf32>
    %129 = arith.addf %127, %128 : vector<8x128xf32>
    %130 = math.tanh %129 : vector<8x128xf32>
    %131 = arith.mulf %126, %130 : vector<8x128xf32>
    %c3_37 = arith.constant 3 : index
    %c0_38 = arith.constant 0 : index
    %c0_39 = arith.constant 0 : index
    %132 = vector.load %arg2[%c3_37, %c0_38, %c0_39] : memref<10x8x128xf32, #tpu.memory_space<vmem>>, vector<1x8x128xf32>
    %133 = vector.shape_cast %132 : vector<1x8x128xf32> to vector<8x128xf32>
    %134 = vector.shape_cast %131 : vector<8x128xf32> to vector<1x8x128xf32>
    tpu.vector_store %arg2[%c3_37, %c0_38, %c0_39], %134 {strides = array<i32>} : memref<10x8x128xf32, #tpu.memory_space<vmem>>, vector<1x8x128xf32>,
    %c4 = arith.constant 4 : index
    %c0_40 = arith.constant 0 : index
    %c0_41 = arith.constant 0 : index
    %135 = vector.load %arg0[%c4, %c0_40, %c0_41] : memref<10x8x128xf32, #tpu.memory_space<vmem>>, vector<1x8x128xf32>
    %136 = vector.shape_cast %135 : vector<1x8x128xf32> to vector<8x128xf32>
    %137 = tpu.concatenate %136, %131 in 1 : vector<8x128xf32>, vector<8x128xf32> -> vector<8x256xf32>
    %138 = arith.truncf %137 : vector<8x256xf32> to vector<8x256xbf16>
    %cst_42 = arith.constant dense<0.000000e+00> : vector<8x512xf32>
    %139 = tpu.matmul %138, %0, %cst_42 {dimension_numbers = #tpu.dot_dimension_numbers<[1], [0], [0], [1], [0, 0, 1, 1], [], []>} : vector<8x256xbf16>, vector<256x512xbf16>, vector<8x512xf32> -> vector<8x512xf32>
    %140 = vector.extract_strided_slice %139 {offsets = [0, 0], sizes = [8, 128], strides = [1, 1]} : vector<8x512xf32> to vector<8x128xf32>
    %141 = arith.negf %140 : vector<8x128xf32>
    %142 = math.exp %141 : vector<8x128xf32>
    %cst_43 = arith.constant 1.000000e+00 : f32
    %143 = vector.broadcast %cst_43 : f32 to vector<8x128xf32>
    %144 = arith.addf %143, %142 : vector<8x128xf32>
    %145 = arith.divf %143, %144 : vector<8x128xf32>
    %146 = vector.extract_strided_slice %139 {offsets = [0, 128], sizes = [8, 128], strides = [1, 1]} : vector<8x512xf32> to vector<8x128xf32>
    %147 = arith.negf %146 : vector<8x128xf32>
    %148 = math.exp %147 : vector<8x128xf32>
    %cst_44 = arith.constant 1.000000e+00 : f32
    %149 = vector.broadcast %cst_44 : f32 to vector<8x128xf32>
    %150 = arith.addf %149, %148 : vector<8x128xf32>
    %151 = arith.divf %149, %150 : vector<8x128xf32>
    %152 = vector.extract_strided_slice %139 {offsets = [0, 256], sizes = [8, 128], strides = [1, 1]} : vector<8x512xf32> to vector<8x128xf32>
    %153 = math.tanh %152 : vector<8x128xf32>
    %154 = vector.extract_strided_slice %139 {offsets = [0, 384], sizes = [8, 128], strides = [1, 1]} : vector<8x512xf32> to vector<8x128xf32>
    %155 = arith.negf %154 : vector<8x128xf32>
    %156 = math.exp %155 : vector<8x128xf32>
    %cst_45 = arith.constant 1.000000e+00 : f32
    %157 = vector.broadcast %cst_45 : f32 to vector<8x128xf32>
    %158 = arith.addf %157, %156 : vector<8x128xf32>
    %159 = arith.divf %157, %158 : vector<8x128xf32>
    %160 = arith.mulf %151, %129 : vector<8x128xf32>
    %161 = arith.mulf %145, %153 : vector<8x128xf32>
    %162 = arith.addf %160, %161 : vector<8x128xf32>
    %163 = math.tanh %162 : vector<8x128xf32>
    %164 = arith.mulf %159, %163 : vector<8x128xf32>
    %c4_46 = arith.constant 4 : index
    %c0_47 = arith.constant 0 : index
    %c0_48 = arith.constant 0 : index
    %165 = vector.load %arg2[%c4_46, %c0_47, %c0_48] : memref<10x8x128xf32, #tpu.memory_space<vmem>>, vector<1x8x128xf32>
    %166 = vector.shape_cast %165 : vector<1x8x128xf32> to vector<8x128xf32>
    %167 = vector.shape_cast %164 : vector<8x128xf32> to vector<1x8x128xf32>
    tpu.vector_store %arg2[%c4_46, %c0_47, %c0_48], %167 {strides = array<i32>} : memref<10x8x128xf32, #tpu.memory_space<vmem>>, vector<1x8x128xf32>,
    %c5 = arith.constant 5 : index
    %c0_49 = arith.constant 0 : index
    %c0_50 = arith.constant 0 : index
    %168 = vector.load %arg0[%c5, %c0_49, %c0_50] : memref<10x8x128xf32, #tpu.memory_space<vmem>>, vector<1x8x128xf32>
    %169 = vector.shape_cast %168 : vector<1x8x128xf32> to vector<8x128xf32>
    %170 = tpu.concatenate %169, %164 in 1 : vector<8x128xf32>, vector<8x128xf32> -> vector<8x256xf32>
    %171 = arith.truncf %170 : vector<8x256xf32> to vector<8x256xbf16>
    %cst_51 = arith.constant dense<0.000000e+00> : vector<8x512xf32>
    %172 = tpu.matmul %171, %0, %cst_51 {dimension_numbers = #tpu.dot_dimension_numbers<[1], [0], [0], [1], [0, 0, 1, 1], [], []>} : vector<8x256xbf16>, vector<256x512xbf16>, vector<8x512xf32> -> vector<8x512xf32>
    %173 = vector.extract_strided_slice %172 {offsets = [0, 0], sizes = [8, 128], strides = [1, 1]} : vector<8x512xf32> to vector<8x128xf32>
    %174 = arith.negf %173 : vector<8x128xf32>
    %175 = math.exp %174 : vector<8x128xf32>
    %cst_52 = arith.constant 1.000000e+00 : f32
    %176 = vector.broadcast %cst_52 : f32 to vector<8x128xf32>
    %177 = arith.addf %176, %175 : vector<8x128xf32>
    %178 = arith.divf %176, %177 : vector<8x128xf32>
    %179 = vector.extract_strided_slice %172 {offsets = [0, 128], sizes = [8, 128], strides = [1, 1]} : vector<8x512xf32> to vector<8x128xf32>
    %180 = arith.negf %179 : vector<8x128xf32>
    %181 = math.exp %180 : vector<8x128xf32>
    %cst_53 = arith.constant 1.000000e+00 : f32
    %182 = vector.broadcast %cst_53 : f32 to vector<8x128xf32>
    %183 = arith.addf %182, %181 : vector<8x128xf32>
    %184 = arith.divf %182, %183 : vector<8x128xf32>
    %185 = vector.extract_strided_slice %172 {offsets = [0, 256], sizes = [8, 128], strides = [1, 1]} : vector<8x512xf32> to vector<8x128xf32>
    %186 = math.tanh %185 : vector<8x128xf32>
    %187 = vector.extract_strided_slice %172 {offsets = [0, 384], sizes = [8, 128], strides = [1, 1]} : vector<8x512xf32> to vector<8x128xf32>
    %188 = arith.negf %187 : vector<8x128xf32>
    %189 = math.exp %188 : vector<8x128xf32>
    %cst_54 = arith.constant 1.000000e+00 : f32
    %190 = vector.broadcast %cst_54 : f32 to vector<8x128xf32>
    %191 = arith.addf %190, %189 : vector<8x128xf32>
    %192 = arith.divf %190, %191 : vector<8x128xf32>
    %193 = arith.mulf %184, %162 : vector<8x128xf32>
    %194 = arith.mulf %178, %186 : vector<8x128xf32>
    %195 = arith.addf %193, %194 : vector<8x128xf32>
    %196 = math.tanh %195 : vector<8x128xf32>
    %197 = arith.mulf %192, %196 : vector<8x128xf32>
    %c5_55 = arith.constant 5 : index
    %c0_56 = arith.constant 0 : index
    %c0_57 = arith.constant 0 : index
    %198 = vector.load %arg2[%c5_55, %c0_56, %c0_57] : memref<10x8x128xf32, #tpu.memory_space<vmem>>, vector<1x8x128xf32>
    %199 = vector.shape_cast %198 : vector<1x8x128xf32> to vector<8x128xf32>
    %200 = vector.shape_cast %197 : vector<8x128xf32> to vector<1x8x128xf32>
    tpu.vector_store %arg2[%c5_55, %c0_56, %c0_57], %200 {strides = array<i32>} : memref<10x8x128xf32, #tpu.memory_space<vmem>>, vector<1x8x128xf32>,
    %c6 = arith.constant 6 : index
    %c0_58 = arith.constant 0 : index
    %c0_59 = arith.constant 0 : index
    %201 = vector.load %arg0[%c6, %c0_58, %c0_59] : memref<10x8x128xf32, #tpu.memory_space<vmem>>, vector<1x8x128xf32>
    %202 = vector.shape_cast %201 : vector<1x8x128xf32> to vector<8x128xf32>
    %203 = tpu.concatenate %202, %197 in 1 : vector<8x128xf32>, vector<8x128xf32> -> vector<8x256xf32>
    %204 = arith.truncf %203 : vector<8x256xf32> to vector<8x256xbf16>
    %cst_60 = arith.constant dense<0.000000e+00> : vector<8x512xf32>
    %205 = tpu.matmul %204, %0, %cst_60 {dimension_numbers = #tpu.dot_dimension_numbers<[1], [0], [0], [1], [0, 0, 1, 1], [], []>} : vector<8x256xbf16>, vector<256x512xbf16>, vector<8x512xf32> -> vector<8x512xf32>
    %206 = vector.extract_strided_slice %205 {offsets = [0, 0], sizes = [8, 128], strides = [1, 1]} : vector<8x512xf32> to vector<8x128xf32>
    %207 = arith.negf %206 : vector<8x128xf32>
    %208 = math.exp %207 : vector<8x128xf32>
    %cst_61 = arith.constant 1.000000e+00 : f32
    %209 = vector.broadcast %cst_61 : f32 to vector<8x128xf32>
    %210 = arith.addf %209, %208 : vector<8x128xf32>
    %211 = arith.divf %209, %210 : vector<8x128xf32>
    %212 = vector.extract_strided_slice %205 {offsets = [0, 128], sizes = [8, 128], strides = [1, 1]} : vector<8x512xf32> to vector<8x128xf32>
    %213 = arith.negf %212 : vector<8x128xf32>
    %214 = math.exp %213 : vector<8x128xf32>
    %cst_62 = arith.constant 1.000000e+00 : f32
    %215 = vector.broadcast %cst_62 : f32 to vector<8x128xf32>
    %216 = arith.addf %215, %214 : vector<8x128xf32>
    %217 = arith.divf %215, %216 : vector<8x128xf32>
    %218 = vector.extract_strided_slice %205 {offsets = [0, 256], sizes = [8, 128], strides = [1, 1]} : vector<8x512xf32> to vector<8x128xf32>
    %219 = math.tanh %218 : vector<8x128xf32>
    %220 = vector.extract_strided_slice %205 {offsets = [0, 384], sizes = [8, 128], strides = [1, 1]} : vector<8x512xf32> to vector<8x128xf32>
    %221 = arith.negf %220 : vector<8x128xf32>
    %222 = math.exp %221 : vector<8x128xf32>
    %cst_63 = arith.constant 1.000000e+00 : f32
    %223 = vector.broadcast %cst_63 : f32 to vector<8x128xf32>
    %224 = arith.addf %223, %222 : vector<8x128xf32>
    %225 = arith.divf %223, %224 : vector<8x128xf32>
    %226 = arith.mulf %217, %195 : vector<8x128xf32>
    %227 = arith.mulf %211, %219 : vector<8x128xf32>
    %228 = arith.addf %226, %227 : vector<8x128xf32>
    %229 = math.tanh %228 : vector<8x128xf32>
    %230 = arith.mulf %225, %229 : vector<8x128xf32>
    %c6_64 = arith.constant 6 : index
    %c0_65 = arith.constant 0 : index
    %c0_66 = arith.constant 0 : index
    %231 = vector.load %arg2[%c6_64, %c0_65, %c0_66] : memref<10x8x128xf32, #tpu.memory_space<vmem>>, vector<1x8x128xf32>
    %232 = vector.shape_cast %231 : vector<1x8x128xf32> to vector<8x128xf32>
    %233 = vector.shape_cast %230 : vector<8x128xf32> to vector<1x8x128xf32>
    tpu.vector_store %arg2[%c6_64, %c0_65, %c0_66], %233 {strides = array<i32>} : memref<10x8x128xf32, #tpu.memory_space<vmem>>, vector<1x8x128xf32>,
    %c7 = arith.constant 7 : index
    %c0_67 = arith.constant 0 : index
    %c0_68 = arith.constant 0 : index
    %234 = vector.load %arg0[%c7, %c0_67, %c0_68] : memref<10x8x128xf32, #tpu.memory_space<vmem>>, vector<1x8x128xf32>
    %235 = vector.shape_cast %234 : vector<1x8x128xf32> to vector<8x128xf32>
    %236 = tpu.concatenate %235, %230 in 1 : vector<8x128xf32>, vector<8x128xf32> -> vector<8x256xf32>
    %237 = arith.truncf %236 : vector<8x256xf32> to vector<8x256xbf16>
    %cst_69 = arith.constant dense<0.000000e+00> : vector<8x512xf32>
    %238 = tpu.matmul %237, %0, %cst_69 {dimension_numbers = #tpu.dot_dimension_numbers<[1], [0], [0], [1], [0, 0, 1, 1], [], []>} : vector<8x256xbf16>, vector<256x512xbf16>, vector<8x512xf32> -> vector<8x512xf32>
    %239 = vector.extract_strided_slice %238 {offsets = [0, 0], sizes = [8, 128], strides = [1, 1]} : vector<8x512xf32> to vector<8x128xf32>
    %240 = arith.negf %239 : vector<8x128xf32>
    %241 = math.exp %240 : vector<8x128xf32>
    %cst_70 = arith.constant 1.000000e+00 : f32
    %242 = vector.broadcast %cst_70 : f32 to vector<8x128xf32>
    %243 = arith.addf %242, %241 : vector<8x128xf32>
    %244 = arith.divf %242, %243 : vector<8x128xf32>
    %245 = vector.extract_strided_slice %238 {offsets = [0, 128], sizes = [8, 128], strides = [1, 1]} : vector<8x512xf32> to vector<8x128xf32>
    %246 = arith.negf %245 : vector<8x128xf32>
    %247 = math.exp %246 : vector<8x128xf32>
    %cst_71 = arith.constant 1.000000e+00 : f32
    %248 = vector.broadcast %cst_71 : f32 to vector<8x128xf32>
    %249 = arith.addf %248, %247 : vector<8x128xf32>
    %250 = arith.divf %248, %249 : vector<8x128xf32>
    %251 = vector.extract_strided_slice %238 {offsets = [0, 256], sizes = [8, 128], strides = [1, 1]} : vector<8x512xf32> to vector<8x128xf32>
    %252 = math.tanh %251 : vector<8x128xf32>
    %253 = vector.extract_strided_slice %238 {offsets = [0, 384], sizes = [8, 128], strides = [1, 1]} : vector<8x512xf32> to vector<8x128xf32>
    %254 = arith.negf %253 : vector<8x128xf32>
    %255 = math.exp %254 : vector<8x128xf32>
    %cst_72 = arith.constant 1.000000e+00 : f32
    %256 = vector.broadcast %cst_72 : f32 to vector<8x128xf32>
    %257 = arith.addf %256, %255 : vector<8x128xf32>
    %258 = arith.divf %256, %257 : vector<8x128xf32>
    %259 = arith.mulf %250, %228 : vector<8x128xf32>
    %260 = arith.mulf %244, %252 : vector<8x128xf32>
    %261 = arith.addf %259, %260 : vector<8x128xf32>
    %262 = math.tanh %261 : vector<8x128xf32>
    %263 = arith.mulf %258, %262 : vector<8x128xf32>
    %c7_73 = arith.constant 7 : index
    %c0_74 = arith.constant 0 : index
    %c0_75 = arith.constant 0 : index
    %264 = vector.load %arg2[%c7_73, %c0_74, %c0_75] : memref<10x8x128xf32, #tpu.memory_space<vmem>>, vector<1x8x128xf32>
    %265 = vector.shape_cast %264 : vector<1x8x128xf32> to vector<8x128xf32>
    %266 = vector.shape_cast %263 : vector<8x128xf32> to vector<1x8x128xf32>
    tpu.vector_store %arg2[%c7_73, %c0_74, %c0_75], %266 {strides = array<i32>} : memref<10x8x128xf32, #tpu.memory_space<vmem>>, vector<1x8x128xf32>,
    %c8 = arith.constant 8 : index
    %c0_76 = arith.constant 0 : index
    %c0_77 = arith.constant 0 : index
    %267 = vector.load %arg0[%c8, %c0_76, %c0_77] : memref<10x8x128xf32, #tpu.memory_space<vmem>>, vector<1x8x128xf32>
    %268 = vector.shape_cast %267 : vector<1x8x128xf32> to vector<8x128xf32>
    %269 = tpu.concatenate %268, %263 in 1 : vector<8x128xf32>, vector<8x128xf32> -> vector<8x256xf32>
    %270 = arith.truncf %269 : vector<8x256xf32> to vector<8x256xbf16>
    %cst_78 = arith.constant dense<0.000000e+00> : vector<8x512xf32>
    %271 = tpu.matmul %270, %0, %cst_78 {dimension_numbers = #tpu.dot_dimension_numbers<[1], [0], [0], [1], [0, 0, 1, 1], [], []>} : vector<8x256xbf16>, vector<256x512xbf16>, vector<8x512xf32> -> vector<8x512xf32>
    %272 = vector.extract_strided_slice %271 {offsets = [0, 0], sizes = [8, 128], strides = [1, 1]} : vector<8x512xf32> to vector<8x128xf32>
    %273 = arith.negf %272 : vector<8x128xf32>
    %274 = math.exp %273 : vector<8x128xf32>
    %cst_79 = arith.constant 1.000000e+00 : f32
    %275 = vector.broadcast %cst_79 : f32 to vector<8x128xf32>
    %276 = arith.addf %275, %274 : vector<8x128xf32>
    %277 = arith.divf %275, %276 : vector<8x128xf32>
    %278 = vector.extract_strided_slice %271 {offsets = [0, 128], sizes = [8, 128], strides = [1, 1]} : vector<8x512xf32> to vector<8x128xf32>
    %279 = arith.negf %278 : vector<8x128xf32>
    %280 = math.exp %279 : vector<8x128xf32>
    %cst_80 = arith.constant 1.000000e+00 : f32
    %281 = vector.broadcast %cst_80 : f32 to vector<8x128xf32>
    %282 = arith.addf %281, %280 : vector<8x128xf32>
    %283 = arith.divf %281, %282 : vector<8x128xf32>
    %284 = vector.extract_strided_slice %271 {offsets = [0, 256], sizes = [8, 128], strides = [1, 1]} : vector<8x512xf32> to vector<8x128xf32>
    %285 = math.tanh %284 : vector<8x128xf32>
    %286 = vector.extract_strided_slice %271 {offsets = [0, 384], sizes = [8, 128], strides = [1, 1]} : vector<8x512xf32> to vector<8x128xf32>
    %287 = arith.negf %286 : vector<8x128xf32>
    %288 = math.exp %287 : vector<8x128xf32>
    %cst_81 = arith.constant 1.000000e+00 : f32
    %289 = vector.broadcast %cst_81 : f32 to vector<8x128xf32>
    %290 = arith.addf %289, %288 : vector<8x128xf32>
    %291 = arith.divf %289, %290 : vector<8x128xf32>
    %292 = arith.mulf %283, %261 : vector<8x128xf32>
    %293 = arith.mulf %277, %285 : vector<8x128xf32>
    %294 = arith.addf %292, %293 : vector<8x128xf32>
    %295 = math.tanh %294 : vector<8x128xf32>
    %296 = arith.mulf %291, %295 : vector<8x128xf32>
    %c8_82 = arith.constant 8 : index
    %c0_83 = arith.constant 0 : index
    %c0_84 = arith.constant 0 : index
    %297 = vector.load %arg2[%c8_82, %c0_83, %c0_84] : memref<10x8x128xf32, #tpu.memory_space<vmem>>, vector<1x8x128xf32>
    %298 = vector.shape_cast %297 : vector<1x8x128xf32> to vector<8x128xf32>
    %299 = vector.shape_cast %296 : vector<8x128xf32> to vector<1x8x128xf32>
    tpu.vector_store %arg2[%c8_82, %c0_83, %c0_84], %299 {strides = array<i32>} : memref<10x8x128xf32, #tpu.memory_space<vmem>>, vector<1x8x128xf32>,
    %c9 = arith.constant 9 : index
    %c0_85 = arith.constant 0 : index
    %c0_86 = arith.constant 0 : index
    %300 = vector.load %arg0[%c9, %c0_85, %c0_86] : memref<10x8x128xf32, #tpu.memory_space<vmem>>, vector<1x8x128xf32>
    %301 = vector.shape_cast %300 : vector<1x8x128xf32> to vector<8x128xf32>
    %302 = tpu.concatenate %301, %296 in 1 : vector<8x128xf32>, vector<8x128xf32> -> vector<8x256xf32>
    %303 = arith.truncf %302 : vector<8x256xf32> to vector<8x256xbf16>
    %cst_87 = arith.constant dense<0.000000e+00> : vector<8x512xf32>
    %304 = tpu.matmul %303, %0, %cst_87 {dimension_numbers = #tpu.dot_dimension_numbers<[1], [0], [0], [1], [0, 0, 1, 1], [], []>} : vector<8x256xbf16>, vector<256x512xbf16>, vector<8x512xf32> -> vector<8x512xf32>
    %305 = vector.extract_strided_slice %304 {offsets = [0, 0], sizes = [8, 128], strides = [1, 1]} : vector<8x512xf32> to vector<8x128xf32>
    %306 = arith.negf %305 : vector<8x128xf32>
    %307 = math.exp %306 : vector<8x128xf32>
    %cst_88 = arith.constant 1.000000e+00 : f32
    %308 = vector.broadcast %cst_88 : f32 to vector<8x128xf32>
    %309 = arith.addf %308, %307 : vector<8x128xf32>
    %310 = arith.divf %308, %309 : vector<8x128xf32>
    %311 = vector.extract_strided_slice %304 {offsets = [0, 128], sizes = [8, 128], strides = [1, 1]} : vector<8x512xf32> to vector<8x128xf32>
    %312 = arith.negf %311 : vector<8x128xf32>
    %313 = math.exp %312 : vector<8x128xf32>
    %cst_89 = arith.constant 1.000000e+00 : f32
    %314 = vector.broadcast %cst_89 : f32 to vector<8x128xf32>
    %315 = arith.addf %314, %313 : vector<8x128xf32>
    %316 = arith.divf %314, %315 : vector<8x128xf32>
    %317 = vector.extract_strided_slice %304 {offsets = [0, 256], sizes = [8, 128], strides = [1, 1]} : vector<8x512xf32> to vector<8x128xf32>
    %318 = math.tanh %317 : vector<8x128xf32>
    %319 = vector.extract_strided_slice %304 {offsets = [0, 384], sizes = [8, 128], strides = [1, 1]} : vector<8x512xf32> to vector<8x128xf32>
    %320 = arith.negf %319 : vector<8x128xf32>
    %321 = math.exp %320 : vector<8x128xf32>
    %cst_90 = arith.constant 1.000000e+00 : f32
    %322 = vector.broadcast %cst_90 : f32 to vector<8x128xf32>
    %323 = arith.addf %322, %321 : vector<8x128xf32>
    %324 = arith.divf %322, %323 : vector<8x128xf32>
    %325 = arith.mulf %316, %294 : vector<8x128xf32>
    %326 = arith.mulf %310, %318 : vector<8x128xf32>
    %327 = arith.addf %325, %326 : vector<8x128xf32>
    %328 = math.tanh %327 : vector<8x128xf32>
    %329 = arith.mulf %324, %328 : vector<8x128xf32>
    %c9_91 = arith.constant 9 : index
    %c0_92 = arith.constant 0 : index
    %c0_93 = arith.constant 0 : index
    %330 = vector.load %arg2[%c9_91, %c0_92, %c0_93] : memref<10x8x128xf32, #tpu.memory_space<vmem>>, vector<1x8x128xf32>
    %331 = vector.shape_cast %330 : vector<1x8x128xf32> to vector<8x128xf32>
    %332 = vector.shape_cast %329 : vector<8x128xf32> to vector<1x8x128xf32>
    tpu.vector_store %arg2[%c9_91, %c0_92, %c0_93], %332 {strides = array<i32>} : memref<10x8x128xf32, #tpu.memory_space<vmem>>, vector<1x8x128xf32>,
    return
  }
}

</mosaic_0001>

<bundles_post_ra>
// kernel: tpu_custom_call.1
= control target key start
LH: loop header
LB: loop body
LE: loop exit
PB: predicated region body
PF: predicated region fallthrough
CT: control target
= control target key end

     0   :  { %7 = vsyncpa [#allocation3], 0  ;;  %s3049_s0 = inlined_call_operand.hbm [shape: f32[10,8,128], index: 0, kind: input, shape index: {}]   ;;  %s3050_s1 = inlined_call_operand.hbm [shape: bf16[256,512], index: 1, kind: input, shape index: {}]   ;;  %s3051_s2 = inlined_call_operand.hbm [shape: f32[10,8,128], index: 2, kind: output, shape index: {}]  }
   0x1   :  { %8 = vsyncpa [#allocation6], 0 }
   0x2   :  { %9 = vsyncpa [#allocation4], 0  ;;  %s2055_s9 = smov [#allocation2]   ;;  %s1983_s13 = scalar_lea.hbm %s3049_s0, 1280 }
   0x3   :  { %s15_s10 = sshll.u32 %s2055_s9, 4  ;;  %p1984_p0 = scmp.ne.s32.totalorder %s3049_s0, %s1983_s13  ;;  %s16_s10 = int_to_ptr.vmem [resolvable:$true] %s15_s10 }
   0x4   :  { %p1987_p1 = scmp.lt.u32.totalorder %s1983_s13, %s3049_s0 }
   0x6   :  { %p1989_p2 = pnand %p1987_p1, %p1984_p0 }
   0x8   :  { %1992 = shalt.err (!%p1989_p2)
}
   0x9   :  { %s1993_s18 = scalar_lea.vmem %s16_s10, 1280  ;;  %p1998_p4 = scmp.lt.s32.totalorder %s16_s10, %s16_s10 }
   0xa   :  { %p1994_p3 = scmp.ne.s32.totalorder %s16_s10, %s1993_s18  ;;  %p1999_p5 = scmp.lt.s32.totalorder %s1993_s18, %s1993_s18 }
   0xc   :  { %p2000_p6 = por %p1999_p5, %p1998_p4 }
   0xe   :  { %p2001_p7 = pnand %p2000_p6, %p1994_p3 }
  0x10   :  { %2004 = shalt.err (!%p2001_p7)
}
  0x11   :  { %s2056_s19 = smov 128   ;;  %s2057_s20 = smov 8  }
  0x12   :  { %21 = dma.hbm_to_vmem [thread:$0]  %s3049_s0, 1280, %s16_s10, [#allocation3], %s2056_s19, %s2056_s19, %s2057_s20  }
  0x13   :  { %s2058_s23 = smov [#allocation5]   ;;  %s2005_s27 = scalar_lea.hbm %s3050_s1, 8192 }
  0x14   :  { %s27_s24 = sshll.u32 %s2058_s23, 4  ;;  %p2006_p8 = scmp.ne.s32.totalorder %s3050_s1, %s2005_s27  ;;  %s28_s24 = int_to_ptr.vmem [resolvable:$true] %s27_s24 }
  0x15   :  { %p2009_p9 = scmp.lt.u32.totalorder %s2005_s27, %s3050_s1 }
  0x17   :  { %p2011_p10 = pnand %p2009_p9, %p2006_p8 }
  0x19   :  { %2014 = shalt.err (!%p2011_p10)
}
  0x1a   :  { %s2015_s4 = scalar_lea.vmem %s28_s24, 8192  ;;  %p2020_p12 = scmp.lt.s32.totalorder %s28_s24, %s28_s24 }
  0x1b   :  { %p2016_p11 = scmp.ne.s32.totalorder %s28_s24, %s2015_s4  ;;  %p2021_p13 = scmp.lt.s32.totalorder %s2015_s4, %s2015_s4 }
  0x1d   :  { %p2022_p0 = por %p2021_p13, %p2020_p12 }
  0x1f   :  { %p2023_p1 = pnand %p2022_p0, %p2016_p11 }
  0x21   :  { %2026 = shalt.err (!%p2023_p1)
}
  0x22   :  { %s2059_s0 = smov 256   ;;  %s2060_s5 = smov 16  }
  0x23   :  { %33 = dma.hbm_to_vmem [thread:$0]  %s3050_s1, 8192, %s28_s24, [#allocation6], %s2059_s0, %s2059_s0, %s2060_s5  }
  0x24   :  { %2049 = dma.done.wait [#allocation3], 1280  }
  0x25   :  { %2050 = vsyncadd [#allocation3], 4294966016 }
  0x26   :  { %2051 = dma.done.wait [#allocation6], 8192  }
  0x27   :  { %2052 = vsyncadd [#allocation6], 4294959104  ;;  %v2104_v0 = vld [vmem:[#allocation5 + $0x4] ss:$16 sps:$4 sm:$0xff]   ;;  %v2106_v1 = vld [vmem:[#allocation5] ss:$16 sps:$4 sm:$0xff]  }
  0x28   :  { %3131 = vst [vmem:[#allocation11_spill] sm:$0xff] %v2104_v0  ;;  %426 = vmatprep.subr.bf16.mxu0 %v2104_v0  ;;  %v2109_v2 = vld [vmem:[#allocation5 + $0x24] ss:$16 sps:$4 sm:$0xff]   ;;  %v2112_v3 = vld [vmem:[#allocation5 + $0x20] ss:$16 sps:$4 sm:$0xff]   ;;  %s2061_s1 = smov [#allocation7]  }
  0x29   :  { %427 = vmatpush1.bf16.msra.mxu0 %v2106_v1  ;;  %v2115_v4 = vld [vmem:[#allocation5 + $0x44] ss:$16 sps:$4 sm:$0xff]   ;;  %v2117_v5 = vld [vmem:[#allocation5 + $0xc] ss:$16 sps:$4 sm:$0xff]   ;;  %v2119_v6 = vld [vmem:[#allocation5 + $0x8] ss:$16 sps:$4 sm:$0xff]  }
  0x2a   :  { %428 = vmatprep.subr.bf16.mxu0 %v2109_v2  ;;  %3132 = vst [vmem:[#allocation12_spill] sm:$0xff] %v2117_v5  ;;  %v2122_v7 = vld [vmem:[#allocation5 + $0x40] ss:$16 sps:$4 sm:$0xff]   ;;  %467 = vmatprep.subr.bf16.mxu1 %v2117_v5  ;;  %v2126_v8 = vld [vmem:[#allocation5 + $0x64] ss:$16 sps:$4 sm:$0xff]   ;;  %s1546_s8 = sshll.u32 %s2061_s1, 4  ;;  %s1547_s8 = int_to_ptr.vmem [resolvable:$true] %s1546_s8 }
  0x2b   :  { %468 = vmatpush1.bf16.msra.mxu1 %v2119_v6  ;;  %v2129_v9 = vld [vmem:[#allocation5 + $0x2c] ss:$16 sps:$4 sm:$0xff]   ;;  %v2131_v10 = vld [vmem:[#allocation5 + $0x28] ss:$16 sps:$4 sm:$0xff]   ;;  %v2135_v11 = vld [vmem:[#allocation5 + $0x60] ss:$16 sps:$4 sm:$0xff]   ;;  %p2032_p3 = scmp.lt.s32.totalorder %s1547_s8, %s1547_s8 }
  0x2c   :  { %469 = vmatprep.subr.bf16.mxu1 %v2129_v9  ;;  %v2137_v12 = vld [vmem:[#allocation5 + $0x84] ss:$16 sps:$4 sm:$0xff]   ;;  %v2139_v13 = vld [vmem:[#allocation5 + $0x4c] ss:$16 sps:$4 sm:$0xff]   ;;  %v2143_v14 = vld [vmem:[#allocation5 + $0x48] ss:$16 sps:$4 sm:$0xff]  }
  0x2d   :  { %429 = vmatpush1.bf16.msra.mxu0 %v2112_v3  ;;  %v2146_v15 = vld [vmem:[#allocation5 + $0x6c] ss:$16 sps:$4 sm:$0xff]   ;;  %v2149_v16 = vld [vmem:[#allocation5 + $0x80] ss:$16 sps:$4 sm:$0xff]   ;;  %v2152_v17 = vld [vmem:[#allocation5 + $0xa4] ss:$16 sps:$4 sm:$0xff]  }
  0x2e   :  { %430 = vmatprep.subr.bf16.mxu0 %v2115_v4  ;;  %v2155_v18 = vld [vmem:[#allocation5 + $0x68] ss:$16 sps:$4 sm:$0xff]   ;;  %v2158_v19 = vld [vmem:[#allocation5 + $0x8c] ss:$16 sps:$4 sm:$0xff]   ;;  %v2161_v20 = vld [vmem:[#allocation5 + $0xa0] ss:$16 sps:$4 sm:$0xff]  }
  0x2f   :  { %470 = vmatpush1.bf16.msra.mxu1 %v2131_v10  ;;  %v2163_v21 = vld [vmem:[#allocation5 + $0xc4] ss:$16 sps:$4 sm:$0xff]   ;;  %v2167_v22 = vld [vmem:[#allocation5 + $0x88] ss:$16 sps:$4 sm:$0xff]   ;;  %v2170_v23 = vld [vmem:[#allocation5 + $0xac] ss:$16 sps:$4 sm:$0xff]  }
  0x30   :  { %471 = vmatprep.subr.bf16.mxu1 %v2139_v13  ;;  %v2173_v24 = vld [vmem:[#allocation5 + $0xc0] ss:$16 sps:$4 sm:$0xff]   ;;  %v2176_v25 = vld [vmem:[#allocation5 + $0xe4] ss:$16 sps:$4 sm:$0xff]   ;;  %v2179_v26 = vld [vmem:[#allocation5 + $0xa8] ss:$16 sps:$4 sm:$0xff]  }
  0x31   :  { %431 = vmatpush1.bf16.msra.mxu0 %v2122_v7  ;;  %v2182_v27 = vld [vmem:[#allocation5 + $0xcc] ss:$16 sps:$4 sm:$0xff]   ;;  %v2185_v28 = vld [vmem:[#allocation5 + $0xe0] ss:$16 sps:$4 sm:$0xff]   ;;  %v2187_v29 = vld [vmem:[#allocation5 + $0x104] ss:$16 sps:$4 sm:$0xff]  }
  0x32   :  { %432 = vmatprep.subr.bf16.mxu0 %v2126_v8  ;;  %v2191_v30 = vld [vmem:[#allocation5 + $0xc8] ss:$16 sps:$4 sm:$0xff]   ;;  %v2194_v31 = vld [vmem:[#allocation5 + $0xec] ss:$16 sps:$4 sm:$0xff]   ;;  %v2197_v32 = vld [vmem:[#allocation5 + $0x100] ss:$16 sps:$4 sm:$0xff]  }
  0x33   :  { %472 = vmatpush1.bf16.msra.mxu1 %v2143_v14  ;;  %v2200_v33 = vld [vmem:[#allocation5 + $0x124] ss:$16 sps:$4 sm:$0xff]   ;;  %v2203_v34 = vld [vmem:[#allocation5 + $0xe8] ss:$16 sps:$4 sm:$0xff]   ;;  %v2206_v35 = vld [vmem:[#allocation5 + $0x10c] ss:$16 sps:$4 sm:$0xff]  }
  0x34   :  { %473 = vmatprep.subr.bf16.mxu1 %v2146_v15  ;;  %v2209_v36 = vld [vmem:[#allocation5 + $0x120] ss:$16 sps:$4 sm:$0xff]   ;;  %v2211_v37 = vld [vmem:[#allocation5 + $0x144] ss:$16 sps:$4 sm:$0xff]   ;;  %v2215_v38 = vld [vmem:[#allocation5 + $0x108] ss:$16 sps:$4 sm:$0xff]  }
  0x35   :  { %433 = vmatpush1.bf16.msra.mxu0 %v2135_v11  ;;  %v2218_v39 = vld [vmem:[#allocation5 + $0x12c] ss:$16 sps:$4 sm:$0xff]   ;;  %v2220_v40 = vld [vmem:[#allocation5 + $0x140] ss:$16 sps:$4 sm:$0xff]   ;;  %v2225_v42 = vld [vmem:[#allocation5 + $0x164] ss:$16 sps:$4 sm:$0xff]  }
  0x36   :  { %434 = vmatprep.subr.bf16.mxu0 %v2137_v12  ;;  %v2222_v41 = vld [vmem:[#allocation2] sm:$0xff]  ;;  %v2231_v44 = vld [vmem:[#allocation5 + $0x128] ss:$16 sps:$4 sm:$0xff]   ;;  %v2234_v45 = vld [vmem:[#allocation5 + $0x14c] ss:$16 sps:$4 sm:$0xff]   ;;  %s2027_s9 = scalar_lea.vmem %s1547_s8, 1280 }
  0x37   :  { %474 = vmatpush1.bf16.msra.mxu1 %v2155_v18  ;;  %3133 = vst [vmem:[#allocation13_spill] sm:$0xff] %v2222_v41  ;;  %v105_v43 = vpack.c.bf16 %v2222_v41, %v2222_v41  ;;  %v2237_v46 = vld [vmem:[#allocation5 + $0x160] ss:$16 sps:$4 sm:$0xff]   ;;  %v2240_v47 = vld [vmem:[#allocation5 + $0x184] ss:$16 sps:$4 sm:$0xff]   ;;  %p2028_p2 = scmp.ne.s32.totalorder %s1547_s8, %s2027_s9  ;;  %p2033_p4 = scmp.lt.s32.totalorder %s2027_s9, %s2027_s9 }
  0x38   :  { %475 = vmatprep.subr.bf16.mxu1 %v2158_v19  ;;  %3134 = vst [vmem:[#allocation14_spill] sm:$0xff] %v2240_v47  ;;  %v2243_v48 = vld [vmem:[#allocation5 + $0x148] ss:$16 sps:$4 sm:$0xff]   ;;  %v2246_v49 = vld [vmem:[#allocation5 + $0x16c] ss:$16 sps:$4 sm:$0xff]  }
  0x39   :  { %435 = vmatpush1.bf16.msra.mxu0 %v2149_v16  ;;  %458 = vmatprep.mubr.bf16.mxu0 %v105_v43  ;;  %v2249_v50 = vld [vmem:[#allocation5 + $0x180] ss:$16 sps:$4 sm:$0xff]   ;;  %v2252_v51 = vld [vmem:[#allocation5 + $0x1a4] ss:$16 sps:$4 sm:$0xff]   ;;  %v2255_v52 = vld [vmem:[#allocation5 + $0x168] ss:$16 sps:$4 sm:$0xff]   ;;  %p2034_p5 = por %p2033_p4, %p2032_p3 }
  0x3a   :  { %436 = vmatprep.subr.bf16.mxu0 %v2152_v17  ;;  %499 = vmatprep.mubr.bf16.mxu1 %v105_v43  ;;  %3135 = vst [vmem:[#allocation15_spill] sm:$0xff] %v2249_v50  ;;  %3136 = vst [vmem:[#allocation16_spill] sm:$0xff] %v2252_v51  ;;  %v2258_v53 = vld [vmem:[#allocation5 + $0x18c] ss:$16 sps:$4 sm:$0xff]   ;;  %v2261_v54 = vld [vmem:[#allocation5 + $0x1a0] ss:$16 sps:$4 sm:$0xff]  }
  0x3b   :  { %476 = vmatpush1.bf16.msra.mxu1 %v2167_v22  ;;  %3137 = vst [vmem:[#allocation17_spill] sm:$0xff] %v2255_v52  ;;  %3138 = vst [vmem:[#allocation18_spill] sm:$0xff] %v2258_v53  ;;  %v2264_v55 = vld [vmem:[#allocation5 + $0x1c4] ss:$16 sps:$4 sm:$0xff]   ;;  %v2267_v56 = vld [vmem:[#allocation5 + $0x188] ss:$16 sps:$4 sm:$0xff]   ;;  %p2035_p6 = pnand %p2034_p5, %p2028_p2 }
  0x3c   :  { %477 = vmatprep.subr.bf16.mxu1 %v2170_v23  ;;  %3139 = vst [vmem:[#allocation19_spill] sm:$0xff] %v2261_v54  ;;  %3140 = vst [vmem:[#allocation20_spill] sm:$0xff] %v2264_v55  ;;  %v2270_v57 = vld [vmem:[#allocation5 + $0x1ac] ss:$16 sps:$4 sm:$0xff]   ;;  %v2273_v58 = vld [vmem:[#allocation5 + $0x1c0] ss:$16 sps:$4 sm:$0xff]  }
  0x3d   :  { %437 = vmatpush1.bf16.msra.mxu0 %v2161_v20  ;;  %3141 = vst [vmem:[#allocation21_spill] sm:$0xff] %v2267_v56  ;;  %3142 = vst [vmem:[#allocation22_spill] sm:$0xff] %v2270_v57  ;;  %v2276_v59 = vld [vmem:[#allocation5 + $0x1e4] ss:$16 sps:$4 sm:$0xff]   ;;  %v2279_v60 = vld [vmem:[#allocation5 + $0x1a8] ss:$16 sps:$4 sm:$0xff]  }
  0x3e   :  { %438 = vmatprep.subr.bf16.mxu0 %v2163_v21  ;;  %3143 = vst [vmem:[#allocation23_spill] sm:$0xff] %v2273_v58  ;;  %3144 = vst [vmem:[#allocation24_spill] sm:$0xff] %v2276_v59  ;;  %v2282_v61 = vld [vmem:[#allocation5 + $0x1cc] ss:$16 sps:$4 sm:$0xff]   ;;  %v2285_v62 = vld [vmem:[#allocation5 + $0x1e0] ss:$16 sps:$4 sm:$0xff]  }
  0x3f   :  { %478 = vmatpush1.bf16.msra.mxu1 %v2179_v26  ;;  %3145 = vst [vmem:[#allocation25_spill] sm:$0xff] %v2279_v60  ;;  %3146 = vst [vmem:[#allocation26_spill] sm:$0xff] %v2282_v61  ;;  %v2289_v63 = vld [vmem:[#allocation5 + $0x1c8] ss:$16 sps:$4 sm:$0xff]   ;;  %v2292_v41 = vld [vmem:[#allocation5 + $0x1ec] ss:$16 sps:$4 sm:$0xff]  }
  0x40   :  { %479 = vmatprep.subr.bf16.mxu1 %v2182_v27  ;;  %3147 = vst [vmem:[#allocation27_spill] sm:$0xff] %v2285_v62  ;;  %3148 = vst [vmem:[#allocation28_spill] sm:$0xff] %v2289_v63 }
  0x41   :  { %439 = vmatpush1.bf16.msra.mxu0 %v2173_v24  ;;  %3149 = vst [vmem:[#allocation29_spill] sm:$0xff] %v2292_v41 }
  0x42   :  { %440 = vmatprep.subr.bf16.mxu0 %v2176_v25 }
  0x43   :  { %480 = vmatpush1.bf16.msra.mxu1 %v2191_v30 }
  0x44   :  { %481 = vmatprep.subr.bf16.mxu1 %v2194_v31 }
  0x45   :  { %441 = vmatpush1.bf16.msra.mxu0 %v2185_v28 }
  0x46   :  { %442 = vmatprep.subr.bf16.mxu0 %v2187_v29 }
  0x47   :  { %482 = vmatpush1.bf16.msra.mxu1 %v2203_v34 }
  0x48   :  { %483 = vmatprep.subr.bf16.mxu1 %v2206_v35 }
  0x49   :  { %443 = vmatpush1.bf16.msra.mxu0 %v2197_v32 }
  0x4a   :  { %444 = vmatprep.subr.bf16.mxu0 %v2200_v33 }
  0x4b   :  { %484 = vmatpush1.bf16.msra.mxu1 %v2215_v38 }
  0x4c   :  { %485 = vmatprep.subr.bf16.mxu1 %v2218_v39 }
  0x4d   :  { %445 = vmatpush1.bf16.msra.mxu0 %v2209_v36 }
  0x4e   :  { %446 = vmatprep.subr.bf16.mxu0 %v2211_v37 }
  0x4f   :  { %486 = vmatpush1.bf16.msra.mxu1 %v2231_v44 }
  0x50   :  { %487 = vmatprep.subr.bf16.mxu1 %v2234_v45 }
  0x51   :  { %447 = vmatpush1.bf16.msra.mxu0 %v2220_v40 }
  0x52   :  { %448 = vmatprep.subr.bf16.mxu0 %v2225_v42 }
  0x53   :  { %488 = vmatpush1.bf16.msra.mxu1 %v2243_v48 }
  0x54   :  { %489 = vmatprep.subr.bf16.mxu1 %v2246_v49 }
  0x55   :  { %449 = vmatpush1.bf16.msra.mxu0 %v2237_v46 }
  0x56   :  { %450 = vmatprep.subr.bf16.mxu0 %v2240_v47 }
  0x57   :  { %490 = vmatpush1.bf16.msra.mxu1 %v2255_v52 }
  0x58   :  { %491 = vmatprep.subr.bf16.mxu1 %v2258_v53 }
  0x59   :  { %451 = vmatpush1.bf16.msra.mxu0 %v2249_v50 }
  0x5a   :  { %452 = vmatprep.subr.bf16.mxu0 %v2252_v51 }
  0x5b   :  { %492 = vmatpush1.bf16.msra.mxu1 %v2267_v56 }
  0x5c   :  { %493 = vmatprep.subr.bf16.mxu1 %v2270_v57  ;;  %v2296_v57 = vld [vmem:[#allocation5 + $0x1e8] ss:$16 sps:$4 sm:$0xff]  }
  0x5d   :  { %453 = vmatpush1.bf16.msra.mxu0 %v2261_v54  ;;  %3150 = vst [vmem:[#allocation30_spill] sm:$0xff] %v2296_v57 }
  0x5e   :  { %454 = vmatprep.subr.bf16.mxu0 %v2264_v55 }
  0x5f   :  { %494 = vmatpush1.bf16.msra.mxu1 %v2279_v60 }
  0x60   :  { %495 = vmatprep.subr.bf16.mxu1 %v2282_v61 }
  0x61   :  { %455 = vmatpush1.bf16.msra.mxu0 %v2273_v58 }
  0x62   :  { %456 = vmatprep.subr.bf16.mxu0 %v2276_v59 }
  0x63   :  { %496 = vmatpush1.bf16.msra.mxu1 %v2289_v63 }
  0x64   :  { %497 = vmatprep.subr.bf16.mxu1 %v2292_v41 }
  0x65   :  { %457 = vmatpush1.bf16.msra.mxu0 %v2285_v62 }
  0x66   :  { %537 = vmatprep.subr.bf16.mxu0 %v2104_v0 }
  0x67   :  { %498 = vmatpush1.bf16.msra.mxu1 %v2296_v57 }
  0x68   :  { %459 = vmatmul.mubr.bf16.vlgmr.msra.gmra.mrb[0].mxu0 %v105_v43  ;;  %578 = vmatprep.subr.bf16.mxu1 %v2117_v5 }
  0x69   :  { %538 = vmatpush1.bf16.msra.mxu0 %v2106_v1 }
  0x6a   :  { %539 = vmatprep.subr.bf16.mxu0 %v2109_v2  ;;  %500 = vmatmul.mubr.bf16.vlgmr.msra.gmra.mrb[0].mxu1 %v105_v43  ;;  %v3151_v43 = vld [vmem:[#allocation22_spill] sm:$0xff] }
  0x6b   :  { %579 = vmatpush1.bf16.msra.mxu1 %v2119_v6 }
  0x6c   :  { %580 = vmatprep.subr.bf16.mxu1 %v2129_v9 }
  0x6d   :  { %540 = vmatpush1.bf16.msra.mxu0 %v2112_v3 }
  0x6e   :  { %541 = vmatprep.subr.bf16.mxu0 %v2115_v4 }
  0x6f   :  { %581 = vmatpush1.bf16.msra.mxu1 %v2131_v10 }
  0x70   :  { %582 = vmatprep.subr.bf16.mxu1 %v2139_v13 }
  0x71   :  { %542 = vmatpush1.bf16.msra.mxu0 %v2122_v7 }
  0x72   :  { %543 = vmatprep.subr.bf16.mxu0 %v2126_v8 }
  0x73   :  { %583 = vmatpush1.bf16.msra.mxu1 %v2143_v14 }
  0x74   :  { %584 = vmatprep.subr.bf16.mxu1 %v2146_v15 }
  0x75   :  { %544 = vmatpush1.bf16.msra.mxu0 %v2135_v11 }
  0x76   :  { %545 = vmatprep.subr.bf16.mxu0 %v2137_v12 }
  0x77   :  { %585 = vmatpush1.bf16.msra.mxu1 %v2155_v18 }
  0x78   :  { %586 = vmatprep.subr.bf16.mxu1 %v2158_v19 }
  0x79   :  { %546 = vmatpush1.bf16.msra.mxu0 %v2149_v16 }
  0x7a   :  { %547 = vmatprep.subr.bf16.mxu0 %v2152_v17 }
  0x7b   :  { %587 = vmatpush1.bf16.msra.mxu1 %v2167_v22 }
  0x7c   :  { %588 = vmatprep.subr.bf16.mxu1 %v2170_v23 }
  0x7d   :  { %548 = vmatpush1.bf16.msra.mxu0 %v2161_v20 }
  0x7e   :  { %549 = vmatprep.subr.bf16.mxu0 %v2163_v21 }
  0x7f   :  { %589 = vmatpush1.bf16.msra.mxu1 %v2179_v26 }
  0x80   :  { %590 = vmatprep.subr.bf16.mxu1 %v2182_v27 }
  0x81   :  { %550 = vmatpush1.bf16.msra.mxu0 %v2173_v24 }
  0x82   :  { %551 = vmatprep.subr.bf16.mxu0 %v2176_v25 }
  0x83   :  { %591 = vmatpush1.bf16.msra.mxu1 %v2191_v30 }
  0x84   :  { %592 = vmatprep.subr.bf16.mxu1 %v2194_v31 }
  0x85   :  { %552 = vmatpush1.bf16.msra.mxu0 %v2185_v28 }
  0x86   :  { %553 = vmatprep.subr.bf16.mxu0 %v2187_v29 }
  0x87   :  { %593 = vmatpush1.bf16.msra.mxu1 %v2203_v34 }
  0x88   :  { %594 = vmatprep.subr.bf16.mxu1 %v2206_v35 }
  0x89   :  { %554 = vmatpush1.bf16.msra.mxu0 %v2197_v32 }
  0x8a   :  { %555 = vmatprep.subr.bf16.mxu0 %v2200_v33 }
  0x8b   :  { %595 = vmatpush1.bf16.msra.mxu1 %v2215_v38 }
  0x8c   :  { %596 = vmatprep.subr.bf16.mxu1 %v2218_v39 }
  0x8d   :  { %556 = vmatpush1.bf16.msra.mxu0 %v2209_v36 }
  0x8e   :  { %557 = vmatprep.subr.bf16.mxu0 %v2211_v37 }
  0x8f   :  { %597 = vmatpush1.bf16.msra.mxu1 %v2231_v44 }
  0x90   :  { %598 = vmatprep.subr.bf16.mxu1 %v2234_v45 }
  0x91   :  { %558 = vmatpush1.bf16.msra.mxu0 %v2220_v40 }
  0x92   :  { %559 = vmatprep.subr.bf16.mxu0 %v2225_v42 }
  0x93   :  { %599 = vmatpush1.bf16.msra.mxu1 %v2243_v48 }
  0x94   :  { %600 = vmatprep.subr.bf16.mxu1 %v2246_v49 }
  0x95   :  { %560 = vmatpush1.bf16.msra.mxu0 %v2237_v46 }
  0x96   :  { %561 = vmatprep.subr.bf16.mxu0 %v2240_v47 }
  0x97   :  { %601 = vmatpush1.bf16.msra.mxu1 %v2255_v52 }
  0x98   :  { %602 = vmatprep.subr.bf16.mxu1 %v2258_v53 }
  0x99   :  { %562 = vmatpush1.bf16.msra.mxu0 %v2249_v50 }
  0x9a   :  { %563 = vmatprep.subr.bf16.mxu0 %v2252_v51 }
  0x9b   :  { %603 = vmatpush1.bf16.msra.mxu1 %v2267_v56 }
  0x9c   :  { %604 = vmatprep.subr.bf16.mxu1 %v3151_v43 }
  0x9d   :  { %564 = vmatpush1.bf16.msra.mxu0 %v2261_v54 }
  0x9e   :  { %565 = vmatprep.subr.bf16.mxu0 %v2264_v55 }
  0x9f   :  { %605 = vmatpush1.bf16.msra.mxu1 %v2279_v60 }
  0xa0   :  { %606 = vmatprep.subr.bf16.mxu1 %v2282_v61 }
  0xa1   :  { %566 = vmatpush1.bf16.msra.mxu0 %v2273_v58 }
  0xa2   :  { %567 = vmatprep.subr.bf16.mxu0 %v2276_v59 }
  0xa3   :  { %607 = vmatpush1.bf16.msra.mxu1 %v2289_v63 }
  0xa4   :  { %608 = vmatprep.subr.bf16.mxu1 %v2292_v41 }
  0xa5   :  { %568 = vmatpush1.bf16.msra.mxu0 %v2285_v62 }
  0xa6   :  { %649 = vmatprep.subr.bf16.mxu0 %v2104_v0 }
  0xa7   :  { %609 = vmatpush1.bf16.msra.mxu1 %v2296_v57 }
  0xa8   :  { %690 = vmatprep.subr.bf16.mxu1 %v2117_v5 }
 0x13b   :  { %v460_v55 = vpop.f32.mrb[0].mxu0 }
 0x13c   :  { %v1623_v58 = vmul.f32 -1.442695, %v460_v55  ;;  %v462_v54 = vpop.f32.mrb[1].mxu0 }
 0x13d   :  { %v1624_v59 = vmul.f32 -1.442695, %v462_v54  ;;  %v464_v43 = vpop.f32.mrb[2].mxu0  ;;  %v501_v61 = vpop.f32.mrb[0].mxu1 }
 0x13e   :  { %1756 = vpow2.f32 %v1623_v58  ;;  %v465_v60 = vpop.f32.mrb[3].mxu0  ;;  %v503_v62 = vpop.f32.mrb[1].mxu1 }
 0x13f   :  { %1758 = vpow2.f32 %v1624_v59  ;;  %v505_v51 = vpop.f32.mrb[2].mxu1  ;;  %v1625_v56 = vmul.f32 -1.442695, %v503_v62  ;;  %v3152_v59 = vld [vmem:[#allocation13_spill] sm:$0xff] }
 0x140   :  { %v506_v63 = vpop.f32.mrb[3].mxu1  ;;  %v3156_v62 = vld [vmem:[#allocation21_spill] sm:$0xff] }
 0x141   :  { %1760 = vpow2.f32 %v1625_v56  ;;  %v534_v56 = vld [vmem:[#allocation2 + $0x8] sm:$0xff] }
 0x142   :  { %1762 = vtanh.f32 %v501_v61  ;;  %v3157_v63 = vld [vmem:[#allocation16_spill] sm:$0xff] }
 0x148   :  { %v1757_v0 = vpop.eup %1756 }
 0x149   :  { %v1759_v41 = vpop.eup %1758  ;;  %v511_v50 = vadd.f32 1.0, %v1757_v0 }
 0x14a   :  { %v517_v57 = vadd.f32 1.0, %v1759_v41  ;;  %v535_v41 = vpack.c.bf16 %v534_v56, %v534_v56  ;;  %v3165_v56 = vld [vmem:[#allocation24_spill] sm:$0xff] }
 0x14b   :  { %1764 = vrcp.f32 %v511_v50  ;;  %v1761_v55 = vpop.eup %1760 }
 0x14c   :  { %1766 = vrcp.f32 %v517_v57  ;;  %v1763_v5 = vpop.eup %1762  ;;  %v524_v43 = vadd.f32 1.0, %v1761_v55  ;;  %v3155_v57 = vld [vmem:[#allocation15_spill] sm:$0xff]  ;;  %v3158_v55 = vld [vmem:[#allocation22_spill] sm:$0xff] }
 0x14e   :  { %1768 = vrcp.f32 %v524_v43  ;;  %v3160_v43 = vld [vmem:[#allocation25_spill] sm:$0xff] }
 0x155   :  { %v1765_v54 = vpop.eup %1764 }
 0x156   :  { %v1767_v58 = vpop.eup %1766  ;;  %v528_v60 = vmul.f32 %v1765_v54, %v1763_v5  ;;  %v3153_v5 = vld [vmem:[#allocation14_spill] sm:$0xff]  ;;  %v3159_v54 = vld [vmem:[#allocation19_spill] sm:$0xff] }
 0x157   :  { %v527_v53 = vmul.f32 %v1767_v58, %v3152_v59  ;;  %v3161_v58 = vld [vmem:[#allocation20_spill] sm:$0xff]  ;;  %v3163_v59 = vld [vmem:[#allocation23_spill] sm:$0xff] }
 0x158   :  { %v1769_v51 = vpop.eup %1768 }
 0x159   :  { %v2367_v47 = vadd.f32 %v528_v60, %v527_v53  ;;  %v3154_v53 = vld [vmem:[#allocation18_spill] sm:$0xff] }
 0x15a   :  { %v3162_v60 = vld [vmem:[#allocation26_spill] sm:$0xff] }
 0x15b   :  { %1770 = vtanh.f32 %v2367_v47 }
 0x165   :  { %v1771_v0 = vpop.eup %1770 }
 0x166   :  { %v531_v61 = vmul.f32 %v1771_v0, %v1769_v51  ;;  %v3164_v51 = vld [vmem:[#allocation28_spill] sm:$0xff]  ;;  %v3166_v0 = vld [vmem:[#allocation29_spill] sm:$0xff] }
 0x168   :  { %532 = vst [vmem:[#allocation7] sm:$0xff] %v531_v61  ;;  %v536_v50 = vpack.c.bf16 %v531_v61, %v531_v61  ;;  %v3167_v61 = vld [vmem:[#allocation27_spill] sm:$0xff] }
 0x16a   :  { %569 = vmatprep.mubr.bf16.mxu0 %v536_v50  ;;  %610 = vmatprep.mubr.bf16.mxu1 %v536_v50  ;;  %v3169_v50 = vld [vmem:[#allocation11_spill] sm:$0xff] }
 0x16b   :  { %570 = vmatmul.mubr.bf16.vlgmr.msra.gmra.mrb[4].mxu0 %v535_v41  ;;  %611 = vmatmul.mubr.bf16.vlgmr.msra.gmra.mrb[4].mxu1 %v535_v41  ;;  %v3168_v41 = vld [vmem:[#allocation30_spill] sm:$0xff] }
 0x16c   :  { %650 = vmatpush1.bf16.msra.mxu0 %v2106_v1  ;;  %691 = vmatpush1.bf16.msra.mxu1 %v2119_v6 }
 0x16d   :  { %651 = vmatprep.subr.bf16.mxu0 %v2109_v2  ;;  %692 = vmatprep.subr.bf16.mxu1 %v2129_v9 }
 0x170   :  { %652 = vmatpush1.bf16.msra.mxu0 %v2112_v3  ;;  %693 = vmatpush1.bf16.msra.mxu1 %v2131_v10 }
 0x171   :  { %653 = vmatprep.subr.bf16.mxu0 %v2115_v4  ;;  %694 = vmatprep.subr.bf16.mxu1 %v2139_v13 }
 0x174   :  { %654 = vmatpush1.bf16.msra.mxu0 %v2122_v7  ;;  %695 = vmatpush1.bf16.msra.mxu1 %v2143_v14 }
 0x175   :  { %655 = vmatprep.subr.bf16.mxu0 %v2126_v8  ;;  %696 = vmatprep.subr.bf16.mxu1 %v2146_v15 }
 0x178   :  { %656 = vmatpush1.bf16.msra.mxu0 %v2135_v11  ;;  %697 = vmatpush1.bf16.msra.mxu1 %v2155_v18 }
 0x179   :  { %657 = vmatprep.subr.bf16.mxu0 %v2137_v12  ;;  %698 = vmatprep.subr.bf16.mxu1 %v2158_v19 }
 0x17c   :  { %658 = vmatpush1.bf16.msra.mxu0 %v2149_v16  ;;  %699 = vmatpush1.bf16.msra.mxu1 %v2167_v22 }
 0x17d   :  { %659 = vmatprep.subr.bf16.mxu0 %v2152_v17  ;;  %700 = vmatprep.subr.bf16.mxu1 %v2170_v23 }
 0x180   :  { %660 = vmatpush1.bf16.msra.mxu0 %v2161_v20  ;;  %701 = vmatpush1.bf16.msra.mxu1 %v2179_v26 }
 0x181   :  { %661 = vmatprep.subr.bf16.mxu0 %v2163_v21  ;;  %702 = vmatprep.subr.bf16.mxu1 %v2182_v27 }
 0x184   :  { %662 = vmatpush1.bf16.msra.mxu0 %v2173_v24  ;;  %703 = vmatpush1.bf16.msra.mxu1 %v2191_v30 }
 0x185   :  { %663 = vmatprep.subr.bf16.mxu0 %v2176_v25  ;;  %704 = vmatprep.subr.bf16.mxu1 %v2194_v31 }
 0x188   :  { %664 = vmatpush1.bf16.msra.mxu0 %v2185_v28  ;;  %705 = vmatpush1.bf16.msra.mxu1 %v2203_v34 }
 0x189   :  { %665 = vmatprep.subr.bf16.mxu0 %v2187_v29  ;;  %706 = vmatprep.subr.bf16.mxu1 %v2206_v35 }
 0x18c   :  { %666 = vmatpush1.bf16.msra.mxu0 %v2197_v32  ;;  %707 = vmatpush1.bf16.msra.mxu1 %v2215_v38 }
 0x18d   :  { %667 = vmatprep.subr.bf16.mxu0 %v2200_v33  ;;  %708 = vmatprep.subr.bf16.mxu1 %v2218_v39 }
 0x190   :  { %668 = vmatpush1.bf16.msra.mxu0 %v2209_v36  ;;  %709 = vmatpush1.bf16.msra.mxu1 %v2231_v44 }
 0x191   :  { %669 = vmatprep.subr.bf16.mxu0 %v2211_v37  ;;  %710 = vmatprep.subr.bf16.mxu1 %v2234_v45 }
 0x194   :  { %670 = vmatpush1.bf16.msra.mxu0 %v2220_v40  ;;  %711 = vmatpush1.bf16.msra.mxu1 %v2243_v48 }
 0x195   :  { %671 = vmatprep.subr.bf16.mxu0 %v2225_v42  ;;  %712 = vmatprep.subr.bf16.mxu1 %v2246_v49 }
 0x198   :  { %672 = vmatpush1.bf16.msra.mxu0 %v2237_v46  ;;  %713 = vmatpush1.bf16.msra.mxu1 %v2255_v52 }
 0x199   :  { %673 = vmatprep.subr.bf16.mxu0 %v3153_v5  ;;  %714 = vmatprep.subr.bf16.mxu1 %v3154_v53 }
 0x19c   :  { %674 = vmatpush1.bf16.msra.mxu0 %v3155_v57  ;;  %715 = vmatpush1.bf16.msra.mxu1 %v3156_v62 }
 0x19d   :  { %675 = vmatprep.subr.bf16.mxu0 %v3157_v63  ;;  %716 = vmatprep.subr.bf16.mxu1 %v3158_v55 }
 0x1a0   :  { %676 = vmatpush1.bf16.msra.mxu0 %v3159_v54  ;;  %717 = vmatpush1.bf16.msra.mxu1 %v3160_v43  ;;  %v3170_v54 = vld [vmem:[#allocation12_spill] sm:$0xff] }
 0x1a1   :  { %677 = vmatprep.subr.bf16.mxu0 %v3161_v58  ;;  %718 = vmatprep.subr.bf16.mxu1 %v3162_v60 }
 0x1a4   :  { %678 = vmatpush1.bf16.msra.mxu0 %v3163_v59  ;;  %719 = vmatpush1.bf16.msra.mxu1 %v3164_v51 }
 0x1a5   :  { %679 = vmatprep.subr.bf16.mxu0 %v3165_v56  ;;  %720 = vmatprep.subr.bf16.mxu1 %v3166_v0 }
 0x1a8   :  { %680 = vmatpush1.bf16.msra.mxu0 %v3167_v61  ;;  %721 = vmatpush1.bf16.msra.mxu1 %v3168_v41 }
 0x1a9   :  { %761 = vmatprep.subr.bf16.mxu0 %v3169_v50  ;;  %802 = vmatprep.subr.bf16.mxu1 %v3170_v54 }
 0x23e   :  { %v571_v43 = vpop.f32.mrb[4].mxu0  ;;  %v612_v58 = vpop.f32.mrb[4].mxu1 }
 0x23f   :  { %v1626_v55 = vmul.f32 -1.442695, %v571_v43  ;;  %v573_v60 = vpop.f32.mrb[5].mxu0  ;;  %v614_v63 = vpop.f32.mrb[5].mxu1 }
 0x240   :  { %v1627_v59 = vmul.f32 -1.442695, %v573_v60  ;;  %v575_v62 = vpop.f32.mrb[6].mxu0  ;;  %v616_v51 = vpop.f32.mrb[6].mxu1  ;;  %v1628_v0 = vmul.f32 -1.442695, %v614_v63 }
 0x241   :  { %1772 = vpow2.f32 %v1626_v55  ;;  %v576_v56 = vpop.f32.mrb[7].mxu0  ;;  %v617_v57 = vpop.f32.mrb[7].mxu1  ;;  %v646_v63 = vld [vmem:[#allocation2 + $0x10] sm:$0xff] }
 0x242   :  { %1774 = vpow2.f32 %v1627_v59  ;;  %v647_v56 = vpack.c.bf16 %v646_v63, %v646_v63  ;;  %v3187_v63 = vld [vmem:[#allocation30_spill] sm:$0xff] }
 0x243   :  { %1776 = vpow2.f32 %v1628_v0  ;;  %v3178_v0 = vld [vmem:[#allocation19_spill] sm:$0xff] }
 0x244   :  { %1778 = vtanh.f32 %v612_v58 }
 0x24b   :  { %v1773_v61 = vpop.eup %1772 }
 0x24c   :  { %v1775_v41 = vpop.eup %1774  ;;  %v622_v53 = vadd.f32 1.0, %v1773_v61  ;;  %v3179_v61 = vld [vmem:[#allocation25_spill] sm:$0xff] }
 0x24d   :  { %v628_v50 = vadd.f32 1.0, %v1775_v41  ;;  %v1777_v54 = vpop.eup %1776  ;;  %v3180_v41 = vld [vmem:[#allocation20_spill] sm:$0xff] }
 0x24e   :  { %1780 = vrcp.f32 %v622_v53  ;;  %v1779_v43 = vpop.eup %1778  ;;  %v635_v52 = vadd.f32 1.0, %v1777_v54  ;;  %v3177_v54 = vld [vmem:[#allocation22_spill] sm:$0xff] }
 0x24f   :  { %1782 = vrcp.f32 %v628_v50  ;;  %v3181_v50 = vld [vmem:[#allocation26_spill] sm:$0xff] }
 0x250   :  { %1784 = vrcp.f32 %v635_v52  ;;  %v3175_v52 = vld [vmem:[#allocation21_spill] sm:$0xff] }
 0x258   :  { %v1781_v5 = vpop.eup %1780 }
 0x259   :  { %v1783_v60 = vpop.eup %1782  ;;  %v639_v62 = vmul.f32 %v1781_v5, %v1779_v43  ;;  %v3176_v5 = vld [vmem:[#allocation16_spill] sm:$0xff]  ;;  %v3182_v43 = vld [vmem:[#allocation23_spill] sm:$0xff] }
 0x25a   :  { %v638_v55 = vmul.f32 %v1783_v60, %v2367_v47  ;;  %v1785_v57 = vpop.eup %1784  ;;  %v3174_v47 = vld [vmem:[#allocation15_spill] sm:$0xff]  ;;  %v3183_v60 = vld [vmem:[#allocation28_spill] sm:$0xff] }
 0x25c   :  { %v2435_v51 = vadd.f32 %v639_v62, %v638_v55  ;;  %v3184_v62 = vld [vmem:[#allocation24_spill] sm:$0xff]  ;;  %v3185_v55 = vld [vmem:[#allocation29_spill] sm:$0xff] }
 0x25e   :  { %1786 = vtanh.f32 %v2435_v51 }
 0x268   :  { %v1787_v59 = vpop.eup %1786 }
 0x269   :  { %v642_v58 = vmul.f32 %v1787_v59, %v1785_v57  ;;  %v3186_v57 = vld [vmem:[#allocation27_spill] sm:$0xff] }
 0x26a   :  { %v3188_v59 = vld [vmem:[#allocation11_spill] sm:$0xff] }
 0x26b   :  { %644 = vst [vmem:[#allocation7 + $0x8] sm:$0xff] %v642_v58  ;;  %v648_v53 = vpack.c.bf16 %v642_v58, %v642_v58  ;;  %v3189_v58 = vld [vmem:[#allocation12_spill] sm:$0xff] }
 0x26d   :  { %681 = vmatprep.mubr.bf16.mxu0 %v648_v53  ;;  %722 = vmatprep.mubr.bf16.mxu1 %v648_v53 }
 0x26e   :  { %682 = vmatmul.mubr.bf16.vlgmr.msra.gmra.mrb[8].mxu0 %v647_v56  ;;  %723 = vmatmul.mubr.bf16.vlgmr.msra.gmra.mrb[8].mxu1 %v647_v56 }
 0x26f   :  { %762 = vmatpush1.bf16.msra.mxu0 %v2106_v1  ;;  %803 = vmatpush1.bf16.msra.mxu1 %v2119_v6  ;;  %v3171_v1 = vld [vmem:[#allocation17_spill] sm:$0xff] }
 0x270   :  { %763 = vmatprep.subr.bf16.mxu0 %v2109_v2  ;;  %804 = vmatprep.subr.bf16.mxu1 %v2129_v9  ;;  %v3172_v2 = vld [vmem:[#allocation14_spill] sm:$0xff] }
 0x273   :  { %764 = vmatpush1.bf16.msra.mxu0 %v2112_v3  ;;  %805 = vmatpush1.bf16.msra.mxu1 %v2131_v10  ;;  %v3173_v3 = vld [vmem:[#allocation18_spill] sm:$0xff] }
 0x274   :  { %765 = vmatprep.subr.bf16.mxu0 %v2115_v4  ;;  %806 = vmatprep.subr.bf16.mxu1 %v2139_v13 }
 0x277   :  { %766 = vmatpush1.bf16.msra.mxu0 %v2122_v7  ;;  %807 = vmatpush1.bf16.msra.mxu1 %v2143_v14 }
 0x278   :  { %767 = vmatprep.subr.bf16.mxu0 %v2126_v8  ;;  %808 = vmatprep.subr.bf16.mxu1 %v2146_v15 }
 0x27b   :  { %768 = vmatpush1.bf16.msra.mxu0 %v2135_v11  ;;  %809 = vmatpush1.bf16.msra.mxu1 %v2155_v18 }
 0x27c   :  { %769 = vmatprep.subr.bf16.mxu0 %v2137_v12  ;;  %810 = vmatprep.subr.bf16.mxu1 %v2158_v19 }
 0x27f   :  { %770 = vmatpush1.bf16.msra.mxu0 %v2149_v16  ;;  %811 = vmatpush1.bf16.msra.mxu1 %v2167_v22 }
 0x280   :  { %771 = vmatprep.subr.bf16.mxu0 %v2152_v17  ;;  %812 = vmatprep.subr.bf16.mxu1 %v2170_v23 }
 0x283   :  { %772 = vmatpush1.bf16.msra.mxu0 %v2161_v20  ;;  %813 = vmatpush1.bf16.msra.mxu1 %v2179_v26 }
 0x284   :  { %773 = vmatprep.subr.bf16.mxu0 %v2163_v21  ;;  %814 = vmatprep.subr.bf16.mxu1 %v2182_v27 }
 0x287   :  { %774 = vmatpush1.bf16.msra.mxu0 %v2173_v24  ;;  %815 = vmatpush1.bf16.msra.mxu1 %v2191_v30 }
 0x288   :  { %775 = vmatprep.subr.bf16.mxu0 %v2176_v25  ;;  %816 = vmatprep.subr.bf16.mxu1 %v2194_v31 }
 0x28b   :  { %776 = vmatpush1.bf16.msra.mxu0 %v2185_v28  ;;  %817 = vmatpush1.bf16.msra.mxu1 %v2203_v34 }
 0x28c   :  { %777 = vmatprep.subr.bf16.mxu0 %v2187_v29  ;;  %818 = vmatprep.subr.bf16.mxu1 %v2206_v35 }
 0x28f   :  { %778 = vmatpush1.bf16.msra.mxu0 %v2197_v32  ;;  %819 = vmatpush1.bf16.msra.mxu1 %v2215_v38 }
 0x290   :  { %779 = vmatprep.subr.bf16.mxu0 %v2200_v33  ;;  %820 = vmatprep.subr.bf16.mxu1 %v2218_v39 }
 0x293   :  { %780 = vmatpush1.bf16.msra.mxu0 %v2209_v36  ;;  %821 = vmatpush1.bf16.msra.mxu1 %v2231_v44 }
 0x294   :  { %781 = vmatprep.subr.bf16.mxu0 %v2211_v37  ;;  %822 = vmatprep.subr.bf16.mxu1 %v2234_v45 }
 0x297   :  { %782 = vmatpush1.bf16.msra.mxu0 %v2220_v40  ;;  %823 = vmatpush1.bf16.msra.mxu1 %v2243_v48 }
 0x298   :  { %783 = vmatprep.subr.bf16.mxu0 %v2225_v42  ;;  %824 = vmatprep.subr.bf16.mxu1 %v2246_v49 }
 0x29b   :  { %784 = vmatpush1.bf16.msra.mxu0 %v2237_v46  ;;  %825 = vmatpush1.bf16.msra.mxu1 %v3171_v1 }
 0x29c   :  { %785 = vmatprep.subr.bf16.mxu0 %v3172_v2  ;;  %826 = vmatprep.subr.bf16.mxu1 %v3173_v3 }
 0x29f   :  { %786 = vmatpush1.bf16.msra.mxu0 %v3174_v47  ;;  %827 = vmatpush1.bf16.msra.mxu1 %v3175_v52 }
 0x2a0   :  { %787 = vmatprep.subr.bf16.mxu0 %v3176_v5  ;;  %828 = vmatprep.subr.bf16.mxu1 %v3177_v54 }
 0x2a3   :  { %788 = vmatpush1.bf16.msra.mxu0 %v3178_v0  ;;  %829 = vmatpush1.bf16.msra.mxu1 %v3179_v61 }
 0x2a4   :  { %789 = vmatprep.subr.bf16.mxu0 %v3180_v41  ;;  %830 = vmatprep.subr.bf16.mxu1 %v3181_v50 }
 0x2a7   :  { %790 = vmatpush1.bf16.msra.mxu0 %v3182_v43  ;;  %831 = vmatpush1.bf16.msra.mxu1 %v3183_v60 }
 0x2a8   :  { %791 = vmatprep.subr.bf16.mxu0 %v3184_v62  ;;  %832 = vmatprep.subr.bf16.mxu1 %v3185_v55 }
 0x2ab   :  { %792 = vmatpush1.bf16.msra.mxu0 %v3186_v57  ;;  %833 = vmatpush1.bf16.msra.mxu1 %v3187_v63 }
 0x2ac   :  { %873 = vmatprep.subr.bf16.mxu0 %v3188_v59  ;;  %914 = vmatprep.subr.bf16.mxu1 %v3189_v58 }
 0x341   :  { %v683_v56 = vpop.f32.mrb[8].mxu0  ;;  %v724_v53 = vpop.f32.mrb[8].mxu1 }
 0x342   :  { %v1629_v41 = vmul.f32 -1.442695, %v683_v56  ;;  %v685_v50 = vpop.f32.mrb[9].mxu0  ;;  %v726_v61 = vpop.f32.mrb[9].mxu1 }
 0x343   :  { %v1630_v43 = vmul.f32 -1.442695, %v685_v50  ;;  %v687_v0 = vpop.f32.mrb[10].mxu0  ;;  %v728_v60 = vpop.f32.mrb[10].mxu1  ;;  %v1631_v55 = vmul.f32 -1.442695, %v726_v61 }
 0x344   :  { %1788 = vpow2.f32 %v1629_v41  ;;  %v688_v62 = vpop.f32.mrb[11].mxu0  ;;  %v729_v54 = vpop.f32.mrb[11].mxu1  ;;  %v758_v61 = vld [vmem:[#allocation2 + $0x18] sm:$0xff] }
 0x345   :  { %1790 = vpow2.f32 %v1630_v43 }
 0x346   :  { %1792 = vpow2.f32 %v1631_v55  ;;  %v759_v55 = vpack.c.bf16 %v758_v61, %v758_v61  ;;  %v2608_v61 = vld [vmem:[#allocation5 + $0x64] ss:$16 sps:$4 sm:$0xff]  }
 0x347   :  { %1794 = vtanh.f32 %v724_v53 }
 0x34e   :  { %v1789_v57 = vpop.eup %1788 }
 0x34f   :  { %v1791_v63 = vpop.eup %1790  ;;  %v734_v5 = vadd.f32 1.0, %v1789_v57  ;;  %v2506_v57 = vld [vmem:[#allocation5] ss:$16 sps:$4 sm:$0xff]  }
 0x350   :  { %v740_v59 = vadd.f32 1.0, %v1791_v63  ;;  %v1793_v58 = vpop.eup %1792 }
 0x351   :  { %1796 = vrcp.f32 %v734_v5  ;;  %v1795_v56 = vpop.eup %1794  ;;  %v747_v47 = vadd.f32 1.0, %v1793_v58  ;;  %v2585_v58 = vld [vmem:[#allocation5 + $0x8] ss:$16 sps:$4 sm:$0xff]  }
 0x352   :  { %1798 = vrcp.f32 %v740_v59 }
 0x353   :  { %1800 = vrcp.f32 %v747_v47  ;;  %v2514_v47 = vld [vmem:[#allocation5 + $0x20] ss:$16 sps:$4 sm:$0xff]  }
 0x35b   :  { %v1797_v52 = vpop.eup %1796 }
 0x35c   :  { %v1799_v50 = vpop.eup %1798  ;;  %v751_v0 = vmul.f32 %v1797_v52, %v1795_v56  ;;  %v2589_v56 = vld [vmem:[#allocation5 + $0x2c] ss:$16 sps:$4 sm:$0xff]  }
 0x35d   :  { %v750_v41 = vmul.f32 %v1799_v50, %v2435_v51  ;;  %v1801_v54 = vpop.eup %1800  ;;  %v2510_v51 = vld [vmem:[#allocation5 + $0x24] ss:$16 sps:$4 sm:$0xff]   ;;  %v2593_v50 = vld [vmem:[#allocation5 + $0x28] ss:$16 sps:$4 sm:$0xff]  }
 0x35f   :  { %v2503_v60 = vadd.f32 %v751_v0, %v750_v41  ;;  %v2596_v0 = vld [vmem:[#allocation5 + $0x44] ss:$16 sps:$4 sm:$0xff]   ;;  %v2599_v41 = vld [vmem:[#allocation5 + $0x4c] ss:$16 sps:$4 sm:$0xff]  }
 0x361   :  { %1802 = vtanh.f32 %v2503_v60 }
 0x36b   :  { %v1803_v43 = vpop.eup %1802 }
 0x36c   :  { %v754_v62 = vmul.f32 %v1803_v43, %v1801_v54  ;;  %v2605_v54 = vld [vmem:[#allocation5 + $0x48] ss:$16 sps:$4 sm:$0xff]   ;;  %v2611_v43 = vld [vmem:[#allocation5 + $0x6c] ss:$16 sps:$4 sm:$0xff]  }
 0x36e   :  { %756 = vst [vmem:[#allocation7 + $0x10] sm:$0xff] %v754_v62  ;;  %v760_v5 = vpack.c.bf16 %v754_v62, %v754_v62  ;;  %v2614_v62 = vld [vmem:[#allocation5 + $0x60] ss:$16 sps:$4 sm:$0xff]  }
 0x370   :  { %793 = vmatprep.mubr.bf16.mxu0 %v760_v5  ;;  %834 = vmatprep.mubr.bf16.mxu1 %v760_v5  ;;  %v2620_v5 = vld [vmem:[#allocation5 + $0x84] ss:$16 sps:$4 sm:$0xff]  }
 0x371   :  { %794 = vmatmul.mubr.bf16.vlgmr.msra.gmra.mrb[12].mxu0 %v759_v55  ;;  %835 = vmatmul.mubr.bf16.vlgmr.msra.gmra.mrb[12].mxu1 %v759_v55  ;;  %v2617_v55 = vld [vmem:[#allocation5 + $0x68] ss:$16 sps:$4 sm:$0xff]  }
 0x372   :  { %874 = vmatpush1.bf16.msra.mxu0 %v2506_v57  ;;  %915 = vmatpush1.bf16.msra.mxu1 %v2119_v6  ;;  %v3191_v6 = vld [vmem:[#allocation21_spill] sm:$0xff] }
 0x373   :  { %875 = vmatprep.subr.bf16.mxu0 %v2510_v51  ;;  %916 = vmatprep.subr.bf16.mxu1 %v2129_v9  ;;  %v3194_v9 = vld [vmem:[#allocation19_spill] sm:$0xff] }
 0x376   :  { %876 = vmatpush1.bf16.msra.mxu0 %v2514_v47  ;;  %917 = vmatpush1.bf16.msra.mxu1 %v2131_v10  ;;  %v3195_v10 = vld [vmem:[#allocation25_spill] sm:$0xff] }
 0x377   :  { %877 = vmatprep.subr.bf16.mxu0 %v2115_v4  ;;  %918 = vmatprep.subr.bf16.mxu1 %v2139_v13  ;;  %v3190_v4 = vld [vmem:[#allocation15_spill] sm:$0xff] }
 0x378   :  { %v3198_v13 = vld [vmem:[#allocation23_spill] sm:$0xff] }
 0x37a   :  { %878 = vmatpush1.bf16.msra.mxu0 %v2122_v7  ;;  %919 = vmatpush1.bf16.msra.mxu1 %v2143_v14  ;;  %v3192_v7 = vld [vmem:[#allocation16_spill] sm:$0xff] }
 0x37b   :  { %879 = vmatprep.subr.bf16.mxu0 %v2126_v8  ;;  %920 = vmatprep.subr.bf16.mxu1 %v2146_v15  ;;  %v3193_v8 = vld [vmem:[#allocation22_spill] sm:$0xff]  ;;  %v3199_v14 = vld [vmem:[#allocation28_spill] sm:$0xff] }
 0x37c   :  { %v3200_v15 = vld [vmem:[#allocation24_spill] sm:$0xff] }
 0x37e   :  { %880 = vmatpush1.bf16.msra.mxu0 %v2135_v11  ;;  %921 = vmatpush1.bf16.msra.mxu1 %v2155_v18  ;;  %v3196_v11 = vld [vmem:[#allocation20_spill] sm:$0xff]  ;;  %v3203_v18 = vld [vmem:[#allocation30_spill] sm:$0xff] }
 0x37f   :  { %881 = vmatprep.subr.bf16.mxu0 %v2137_v12  ;;  %922 = vmatprep.subr.bf16.mxu1 %v2158_v19  ;;  %v3197_v12 = vld [vmem:[#allocation26_spill] sm:$0xff]  ;;  %v2574_v19 = vld [vmem:[#allocation5 + $0x4] ss:$16 sps:$4 sm:$0xff]  }
 0x380   :  { %3204 = vst [vmem:[#allocation13_spill] sm:$0xff] %v2574_v19 }
 0x382   :  { %882 = vmatpush1.bf16.msra.mxu0 %v2149_v16  ;;  %923 = vmatpush1.bf16.msra.mxu1 %v2167_v22  ;;  %v3201_v16 = vld [vmem:[#allocation29_spill] sm:$0xff] }
 0x383   :  { %883 = vmatprep.subr.bf16.mxu0 %v2152_v17  ;;  %924 = vmatprep.subr.bf16.mxu1 %v2170_v23  ;;  %v3202_v17 = vld [vmem:[#allocation27_spill] sm:$0xff] }
 0x386   :  { %884 = vmatpush1.bf16.msra.mxu0 %v2161_v20  ;;  %925 = vmatpush1.bf16.msra.mxu1 %v2179_v26  ;;  %v2577_v20 = vld [vmem:[#allocation5 + $0xc] ss:$16 sps:$4 sm:$0xff]  }
 0x387   :  { %885 = vmatprep.subr.bf16.mxu0 %v2163_v21  ;;  %926 = vmatprep.subr.bf16.mxu1 %v2182_v27  ;;  %3205 = vst [vmem:[#allocation17_spill] sm:$0xff] %v2577_v20 }
 0x38a   :  { %886 = vmatpush1.bf16.msra.mxu0 %v2173_v24  ;;  %927 = vmatpush1.bf16.msra.mxu1 %v2191_v30 }
 0x38b   :  { %887 = vmatprep.subr.bf16.mxu0 %v2176_v25  ;;  %928 = vmatprep.subr.bf16.mxu1 %v2194_v31 }
 0x38e   :  { %888 = vmatpush1.bf16.msra.mxu0 %v2185_v28  ;;  %929 = vmatpush1.bf16.msra.mxu1 %v2203_v34 }
 0x38f   :  { %889 = vmatprep.subr.bf16.mxu0 %v2187_v29  ;;  %930 = vmatprep.subr.bf16.mxu1 %v2206_v35 }
 0x392   :  { %890 = vmatpush1.bf16.msra.mxu0 %v2197_v32  ;;  %931 = vmatpush1.bf16.msra.mxu1 %v2215_v38 }
 0x393   :  { %891 = vmatprep.subr.bf16.mxu0 %v2200_v33  ;;  %932 = vmatprep.subr.bf16.mxu1 %v2218_v39 }
 0x396   :  { %892 = vmatpush1.bf16.msra.mxu0 %v2209_v36  ;;  %933 = vmatpush1.bf16.msra.mxu1 %v2231_v44 }
 0x397   :  { %893 = vmatprep.subr.bf16.mxu0 %v2211_v37  ;;  %934 = vmatprep.subr.bf16.mxu1 %v2234_v45 }
 0x39a   :  { %894 = vmatpush1.bf16.msra.mxu0 %v2220_v40  ;;  %935 = vmatpush1.bf16.msra.mxu1 %v2243_v48 }
 0x39b   :  { %895 = vmatprep.subr.bf16.mxu0 %v2225_v42  ;;  %936 = vmatprep.subr.bf16.mxu1 %v2246_v49 }
 0x39e   :  { %896 = vmatpush1.bf16.msra.mxu0 %v2237_v46  ;;  %937 = vmatpush1.bf16.msra.mxu1 %v3171_v1 }
 0x39f   :  { %897 = vmatprep.subr.bf16.mxu0 %v3172_v2  ;;  %938 = vmatprep.subr.bf16.mxu1 %v3173_v3  ;;  %v870_v2 = vld [vmem:[#allocation2 + $0x20] sm:$0xff] }
 0x3a0   :  { %v871_v53 = vpack.c.bf16 %v870_v2, %v870_v2  ;;  %v2692_v2 = vld [vmem:[#allocation5 + $0x144] ss:$16 sps:$4 sm:$0xff]  }
 0x3a1   :  { %3206 = vst [vmem:[#allocation14_spill] sm:$0xff] %v2692_v2 }
 0x3a2   :  { %898 = vmatpush1.bf16.msra.mxu0 %v3190_v4  ;;  %939 = vmatpush1.bf16.msra.mxu1 %v3191_v6 }
 0x3a3   :  { %899 = vmatprep.subr.bf16.mxu0 %v3192_v7  ;;  %940 = vmatprep.subr.bf16.mxu1 %v3193_v8 }
 0x3a6   :  { %900 = vmatpush1.bf16.msra.mxu0 %v3194_v9  ;;  %941 = vmatpush1.bf16.msra.mxu1 %v3195_v10 }
 0x3a7   :  { %901 = vmatprep.subr.bf16.mxu0 %v3196_v11  ;;  %942 = vmatprep.subr.bf16.mxu1 %v3197_v12 }
 0x3aa   :  { %902 = vmatpush1.bf16.msra.mxu0 %v3198_v13  ;;  %943 = vmatpush1.bf16.msra.mxu1 %v3199_v14 }
 0x3ab   :  { %903 = vmatprep.subr.bf16.mxu0 %v3200_v15  ;;  %944 = vmatprep.subr.bf16.mxu1 %v3201_v16 }
 0x3ae   :  { %904 = vmatpush1.bf16.msra.mxu0 %v3202_v17  ;;  %945 = vmatpush1.bf16.msra.mxu1 %v3203_v18 }
 0x3af   :  { %985 = vmatprep.subr.bf16.mxu0 %v2574_v19  ;;  %1026 = vmatprep.subr.bf16.mxu1 %v2577_v20 }
 0x444   :  { %v795_v21 = vpop.f32.mrb[12].mxu0  ;;  %v836_v22 = vpop.f32.mrb[12].mxu1 }
 0x445   :  { %v1632_v23 = vmul.f32 -1.442695, %v795_v21  ;;  %v797_v24 = vpop.f32.mrb[13].mxu0  ;;  %v838_v25 = vpop.f32.mrb[13].mxu1  ;;  %v2623_v21 = vld [vmem:[#allocation5 + $0x8c] ss:$16 sps:$4 sm:$0xff]  }
 0x446   :  { %v1633_v26 = vmul.f32 -1.442695, %v797_v24  ;;  %v799_v27 = vpop.f32.mrb[14].mxu0  ;;  %v840_v28 = vpop.f32.mrb[14].mxu1  ;;  %v1634_v31 = vmul.f32 -1.442695, %v838_v25 }
 0x447   :  { %1804 = vpow2.f32 %v1632_v23  ;;  %v800_v29 = vpop.f32.mrb[15].mxu0  ;;  %v841_v30 = vpop.f32.mrb[15].mxu1  ;;  %v2629_v23 = vld [vmem:[#allocation5 + $0x88] ss:$16 sps:$4 sm:$0xff]   ;;  %v2632_v24 = vld [vmem:[#allocation5 + $0xa4] ss:$16 sps:$4 sm:$0xff]  }
 0x448   :  { %1806 = vpow2.f32 %v1633_v26  ;;  %v2635_v25 = vld [vmem:[#allocation5 + $0xac] ss:$16 sps:$4 sm:$0xff]   ;;  %v2638_v26 = vld [vmem:[#allocation5 + $0xa0] ss:$16 sps:$4 sm:$0xff]   ;;  %v2641_v27 = vld [vmem:[#allocation5 + $0xa8] ss:$16 sps:$4 sm:$0xff]  }
 0x449   :  { %1808 = vpow2.f32 %v1634_v31  ;;  %v2644_v28 = vld [vmem:[#allocation5 + $0xc4] ss:$16 sps:$4 sm:$0xff]   ;;  %v2647_v29 = vld [vmem:[#allocation5 + $0xcc] ss:$16 sps:$4 sm:$0xff]   ;;  %v2650_v30 = vld [vmem:[#allocation5 + $0xc0] ss:$16 sps:$4 sm:$0xff]  }
 0x44a   :  { %1810 = vtanh.f32 %v836_v22  ;;  %v2626_v22 = vld [vmem:[#allocation5 + $0x80] ss:$16 sps:$4 sm:$0xff]   ;;  %v2653_v31 = vld [vmem:[#allocation5 + $0xc8] ss:$16 sps:$4 sm:$0xff]  }
 0x451   :  { %v1805_v32 = vpop.eup %1804 }
 0x452   :  { %v1807_v33 = vpop.eup %1806  ;;  %v846_v34 = vadd.f32 1.0, %v1805_v32  ;;  %v2656_v32 = vld [vmem:[#allocation5 + $0xe4] ss:$16 sps:$4 sm:$0xff]  }
 0x453   :  { %v852_v35 = vadd.f32 1.0, %v1807_v33  ;;  %v1809_v36 = vpop.eup %1808  ;;  %v2659_v33 = vld [vmem:[#allocation5 + $0xec] ss:$16 sps:$4 sm:$0xff]  }
 0x454   :  { %1812 = vrcp.f32 %v846_v34  ;;  %v1811_v37 = vpop.eup %1810  ;;  %v859_v39 = vadd.f32 1.0, %v1809_v36  ;;  %v2662_v34 = vld [vmem:[#allocation5 + $0xe0] ss:$16 sps:$4 sm:$0xff]   ;;  %v2668_v36 = vld [vmem:[#allocation5 + $0x104] ss:$16 sps:$4 sm:$0xff]  }
 0x455   :  { %1814 = vrcp.f32 %v852_v35  ;;  %v2665_v35 = vld [vmem:[#allocation5 + $0xe8] ss:$16 sps:$4 sm:$0xff]  }
 0x456   :  { %1816 = vrcp.f32 %v859_v39  ;;  %v2677_v39 = vld [vmem:[#allocation5 + $0x108] ss:$16 sps:$4 sm:$0xff]  }
 0x45e   :  { %v1813_v38 = vpop.eup %1812 }
 0x45f   :  { %v1815_v40 = vpop.eup %1814  ;;  %v863_v42 = vmul.f32 %v1813_v38, %v1811_v37  ;;  %v2671_v37 = vld [vmem:[#allocation5 + $0x10c] ss:$16 sps:$4 sm:$0xff]   ;;  %v2674_v38 = vld [vmem:[#allocation5 + $0x100] ss:$16 sps:$4 sm:$0xff]  }
 0x460   :  { %v862_v44 = vmul.f32 %v1815_v40, %v2503_v60  ;;  %v1817_v46 = vpop.eup %1816  ;;  %v2602_v60 = vld [vmem:[#allocation5 + $0x40] ss:$16 sps:$4 sm:$0xff]   ;;  %v2680_v40 = vld [vmem:[#allocation5 + $0x124] ss:$16 sps:$4 sm:$0xff]  }
 0x462   :  { %v2581_v45 = vadd.f32 %v863_v42, %v862_v44  ;;  %v2683_v42 = vld [vmem:[#allocation5 + $0x12c] ss:$16 sps:$4 sm:$0xff]   ;;  %v2686_v44 = vld [vmem:[#allocation5 + $0x120] ss:$16 sps:$4 sm:$0xff]  }
 0x464   :  { %1818 = vtanh.f32 %v2581_v45 }
 0x46e   :  { %v1819_v52 = vpop.eup %1818 }
 0x46f   :  { %v866_v63 = vmul.f32 %v1819_v52, %v1817_v46  ;;  %v2689_v46 = vld [vmem:[#allocation5 + $0x128] ss:$16 sps:$4 sm:$0xff]   ;;  %v2695_v52 = vld [vmem:[#allocation5 + $0x14c] ss:$16 sps:$4 sm:$0xff]  }
 0x471   :  { %868 = vst [vmem:[#allocation7 + $0x18] sm:$0xff] %v866_v63  ;;  %v872_v59 = vpack.c.bf16 %v866_v63, %v866_v63  ;;  %v2698_v63 = vld [vmem:[#allocation5 + $0x140] ss:$16 sps:$4 sm:$0xff]  }
 0x473   :  { %905 = vmatprep.mubr.bf16.mxu0 %v872_v59  ;;  %946 = vmatprep.mubr.bf16.mxu1 %v872_v59  ;;  %v2706_v59 = vld [vmem:[#allocation5 + $0x160] ss:$16 sps:$4 sm:$0xff]  }
 0x474   :  { %906 = vmatmul.mubr.bf16.vlgmr.msra.gmra.mrb[16].mxu0 %v871_v53  ;;  %947 = vmatmul.mubr.bf16.vlgmr.msra.gmra.mrb[16].mxu1 %v871_v53  ;;  %v2702_v53 = vld [vmem:[#allocation5 + $0x164] ss:$16 sps:$4 sm:$0xff]  }
 0x475   :  { %986 = vmatpush1.bf16.msra.mxu0 %v2506_v57  ;;  %1027 = vmatpush1.bf16.msra.mxu1 %v2585_v58 }
 0x476   :  { %987 = vmatprep.subr.bf16.mxu0 %v2510_v51  ;;  %1028 = vmatprep.subr.bf16.mxu1 %v2589_v56 }
 0x479   :  { %988 = vmatpush1.bf16.msra.mxu0 %v2514_v47  ;;  %1029 = vmatpush1.bf16.msra.mxu1 %v2593_v50 }
 0x47a   :  { %989 = vmatprep.subr.bf16.mxu0 %v2596_v0  ;;  %1030 = vmatprep.subr.bf16.mxu1 %v2599_v41 }
 0x47d   :  { %990 = vmatpush1.bf16.msra.mxu0 %v2602_v60  ;;  %1031 = vmatpush1.bf16.msra.mxu1 %v2605_v54 }
 0x47e   :  { %991 = vmatprep.subr.bf16.mxu0 %v2608_v61  ;;  %1032 = vmatprep.subr.bf16.mxu1 %v2611_v43 }
 0x481   :  { %992 = vmatpush1.bf16.msra.mxu0 %v2614_v62  ;;  %1033 = vmatpush1.bf16.msra.mxu1 %v2617_v55 }
 0x482   :  { %993 = vmatprep.subr.bf16.mxu0 %v2620_v5  ;;  %1034 = vmatprep.subr.bf16.mxu1 %v2623_v21 }
 0x485   :  { %994 = vmatpush1.bf16.msra.mxu0 %v2626_v22  ;;  %1035 = vmatpush1.bf16.msra.mxu1 %v2629_v23 }
 0x486   :  { %995 = vmatprep.subr.bf16.mxu0 %v2632_v24  ;;  %1036 = vmatprep.subr.bf16.mxu1 %v2635_v25 }
 0x489   :  { %996 = vmatpush1.bf16.msra.mxu0 %v2638_v26  ;;  %1037 = vmatpush1.bf16.msra.mxu1 %v2641_v27 }
 0x48a   :  { %997 = vmatprep.subr.bf16.mxu0 %v2644_v28  ;;  %1038 = vmatprep.subr.bf16.mxu1 %v2647_v29 }
 0x48d   :  { %998 = vmatpush1.bf16.msra.mxu0 %v2650_v30  ;;  %1039 = vmatpush1.bf16.msra.mxu1 %v2653_v31 }
 0x48e   :  { %999 = vmatprep.subr.bf16.mxu0 %v2656_v32  ;;  %1040 = vmatprep.subr.bf16.mxu1 %v2659_v33 }
 0x491   :  { %1000 = vmatpush1.bf16.msra.mxu0 %v2662_v34  ;;  %1041 = vmatpush1.bf16.msra.mxu1 %v2665_v35 }
 0x492   :  { %1001 = vmatprep.subr.bf16.mxu0 %v2668_v36  ;;  %1042 = vmatprep.subr.bf16.mxu1 %v2671_v37 }
 0x495   :  { %1002 = vmatpush1.bf16.msra.mxu0 %v2674_v38  ;;  %1043 = vmatpush1.bf16.msra.mxu1 %v2677_v39 }
 0x496   :  { %1003 = vmatprep.subr.bf16.mxu0 %v2680_v40  ;;  %1044 = vmatprep.subr.bf16.mxu1 %v2683_v42 }
 0x499   :  { %1004 = vmatpush1.bf16.msra.mxu0 %v2686_v44  ;;  %1045 = vmatpush1.bf16.msra.mxu1 %v2689_v46 }
 0x49a   :  { %1005 = vmatprep.subr.bf16.mxu0 %v2692_v2  ;;  %1046 = vmatprep.subr.bf16.mxu1 %v2695_v52  ;;  %v2710_v2 = vld [vmem:[#allocation5 + $0x184] ss:$16 sps:$4 sm:$0xff]  }
 0x49b   :  { %3207 = vst [vmem:[#allocation18_spill] sm:$0xff] %v2710_v2 }
 0x49d   :  { %1006 = vmatpush1.bf16.msra.mxu0 %v2698_v63  ;;  %1047 = vmatpush1.bf16.msra.mxu1 %v2243_v48 }
 0x49e   :  { %1007 = vmatprep.subr.bf16.mxu0 %v2702_v53  ;;  %1048 = vmatprep.subr.bf16.mxu1 %v2246_v49 }
 0x4a1   :  { %1008 = vmatpush1.bf16.msra.mxu0 %v2706_v59  ;;  %1049 = vmatpush1.bf16.msra.mxu1 %v3171_v1 }
 0x4a2   :  { %1009 = vmatprep.subr.bf16.mxu0 %v2710_v2  ;;  %1050 = vmatprep.subr.bf16.mxu1 %v3173_v3 }
 0x4a5   :  { %1010 = vmatpush1.bf16.msra.mxu0 %v3190_v4  ;;  %1051 = vmatpush1.bf16.msra.mxu1 %v3191_v6 }
 0x4a6   :  { %1011 = vmatprep.subr.bf16.mxu0 %v3192_v7  ;;  %1052 = vmatprep.subr.bf16.mxu1 %v3193_v8 }
 0x4a9   :  { %1012 = vmatpush1.bf16.msra.mxu0 %v3194_v9  ;;  %1053 = vmatpush1.bf16.msra.mxu1 %v3195_v10 }
 0x4aa   :  { %1013 = vmatprep.subr.bf16.mxu0 %v3196_v11  ;;  %1054 = vmatprep.subr.bf16.mxu1 %v3197_v12 }
 0x4ad   :  { %1014 = vmatpush1.bf16.msra.mxu0 %v3198_v13  ;;  %1055 = vmatpush1.bf16.msra.mxu1 %v3199_v14 }
 0x4ae   :  { %1015 = vmatprep.subr.bf16.mxu0 %v3200_v15  ;;  %1056 = vmatprep.subr.bf16.mxu1 %v3201_v16 }
 0x4b1   :  { %1016 = vmatpush1.bf16.msra.mxu0 %v3202_v17  ;;  %1057 = vmatpush1.bf16.msra.mxu1 %v3203_v18 }
 0x4b2   :  { %1097 = vmatprep.subr.bf16.mxu0 %v2574_v19  ;;  %1138 = vmatprep.subr.bf16.mxu1 %v2577_v20 }
 0x547   :  { %v907_v48 = vpop.f32.mrb[16].mxu0  ;;  %v948_v49 = vpop.f32.mrb[16].mxu1 }
 0x548   :  { %v1635_v1 = vmul.f32 -1.442695, %v907_v48  ;;  %v909_v3 = vpop.f32.mrb[17].mxu0  ;;  %v950_v4 = vpop.f32.mrb[17].mxu1 }
 0x549   :  { %v1636_v6 = vmul.f32 -1.442695, %v909_v3  ;;  %v911_v7 = vpop.f32.mrb[18].mxu0  ;;  %v952_v8 = vpop.f32.mrb[18].mxu1  ;;  %v1637_v11 = vmul.f32 -1.442695, %v950_v4 }
 0x54a   :  { %1820 = vpow2.f32 %v1635_v1  ;;  %v912_v9 = vpop.f32.mrb[19].mxu0  ;;  %v953_v10 = vpop.f32.mrb[19].mxu1 }
 0x54b   :  { %1822 = vpow2.f32 %v1636_v6  ;;  %v982_v6 = vld [vmem:[#allocation2 + $0x28] sm:$0xff] }
 0x54c   :  { %1824 = vpow2.f32 %v1637_v11  ;;  %v983_v10 = vpack.c.bf16 %v982_v6, %v982_v6  ;;  %v2814_v6 = vld [vmem:[#allocation5 + $0x1c0] ss:$16 sps:$4 sm:$0xff]  }
 0x54d   :  { %1826 = vtanh.f32 %v948_v49  ;;  %3219 = vst [vmem:[#allocation23_spill] sm:$0xff] %v2814_v6 }
 0x554   :  { %v1821_v12 = vpop.eup %1820 }
 0x555   :  { %v1823_v13 = vpop.eup %1822  ;;  %v958_v14 = vadd.f32 1.0, %v1821_v12  ;;  %v2775_v12 = vld [vmem:[#allocation5 + $0x148] ss:$16 sps:$4 sm:$0xff]  }
 0x556   :  { %v964_v15 = vadd.f32 1.0, %v1823_v13  ;;  %v1825_v16 = vpop.eup %1824  ;;  %v2779_v13 = vld [vmem:[#allocation5 + $0x16c] ss:$16 sps:$4 sm:$0xff]  }
 0x557   :  { %1828 = vrcp.f32 %v958_v14  ;;  %v1827_v17 = vpop.eup %1826  ;;  %v971_v48 = vadd.f32 1.0, %v1825_v16  ;;  %v2783_v14 = vld [vmem:[#allocation5 + $0x168] ss:$16 sps:$4 sm:$0xff]   ;;  %v2790_v16 = vld [vmem:[#allocation5 + $0x180] ss:$16 sps:$4 sm:$0xff]  }
 0x558   :  { %1830 = vrcp.f32 %v964_v15  ;;  %3209 = vst [vmem:[#allocation11_spill] sm:$0xff] %v2783_v14  ;;  %v2787_v15 = vld [vmem:[#allocation5 + $0x18c] ss:$16 sps:$4 sm:$0xff]   ;;  %3211 = vst [vmem:[#allocation15_spill] sm:$0xff] %v2790_v16 }
 0x559   :  { %1832 = vrcp.f32 %v971_v48  ;;  %3210 = vst [vmem:[#allocation12_spill] sm:$0xff] %v2787_v15  ;;  %v2799_v48 = vld [vmem:[#allocation5 + $0x1ac] ss:$16 sps:$4 sm:$0xff]  }
 0x55a   :  { %3214 = vst [vmem:[#allocation22_spill] sm:$0xff] %v2799_v48 }
 0x561   :  { %v1829_v18 = vpop.eup %1828 }
 0x562   :  { %v1831_v3 = vpop.eup %1830  ;;  %v975_v7 = vmul.f32 %v1829_v18, %v1827_v17  ;;  %v2793_v17 = vld [vmem:[#allocation5 + $0x188] ss:$16 sps:$4 sm:$0xff]   ;;  %v2796_v18 = vld [vmem:[#allocation5 + $0x1a4] ss:$16 sps:$4 sm:$0xff]  }
 0x563   :  { %v974_v1 = vmul.f32 %v1831_v3, %v2581_v45  ;;  %v1833_v4 = vpop.eup %1832  ;;  %v3208_v45 = vld [vmem:[#allocation14_spill] sm:$0xff]  ;;  %3212 = vst [vmem:[#allocation21_spill] sm:$0xff] %v2793_v17  ;;  %3213 = vst [vmem:[#allocation16_spill] sm:$0xff] %v2796_v18  ;;  %v2802_v3 = vld [vmem:[#allocation5 + $0x1a0] ss:$16 sps:$4 sm:$0xff]  }
 0x564   :  { %3215 = vst [vmem:[#allocation19_spill] sm:$0xff] %v2802_v3 }
 0x565   :  { %v2731_v8 = vadd.f32 %v975_v7, %v974_v1  ;;  %v2805_v7 = vld [vmem:[#allocation5 + $0x1a8] ss:$16 sps:$4 sm:$0xff]   ;;  %v2808_v1 = vld [vmem:[#allocation5 + $0x1c4] ss:$16 sps:$4 sm:$0xff]  }
 0x566   :  { %3216 = vst [vmem:[#allocation25_spill] sm:$0xff] %v2805_v7  ;;  %3217 = vst [vmem:[#allocation20_spill] sm:$0xff] %v2808_v1 }
 0x567   :  { %1834 = vtanh.f32 %v2731_v8 }
 0x571   :  { %v1835_v9 = vpop.eup %1834 }
 0x572   :  { %v978_v49 = vmul.f32 %v1835_v9, %v1833_v4  ;;  %v2811_v4 = vld [vmem:[#allocation5 + $0x1cc] ss:$16 sps:$4 sm:$0xff]   ;;  %v2817_v9 = vld [vmem:[#allocation5 + $0x1c8] ss:$16 sps:$4 sm:$0xff]  }
 0x573   :  { %3218 = vst [vmem:[#allocation26_spill] sm:$0xff] %v2811_v4  ;;  %3220 = vst [vmem:[#allocation28_spill] sm:$0xff] %v2817_v9 }
 0x574   :  { %980 = vst [vmem:[#allocation7 + $0x20] sm:$0xff] %v978_v49  ;;  %v984_v11 = vpack.c.bf16 %v978_v49, %v978_v49  ;;  %v2820_v49 = vld [vmem:[#allocation5 + $0x1e4] ss:$16 sps:$4 sm:$0xff]  }
 0x575   :  { %3221 = vst [vmem:[#allocation24_spill] sm:$0xff] %v2820_v49 }
 0x576   :  { %1017 = vmatprep.mubr.bf16.mxu0 %v984_v11  ;;  %1058 = vmatprep.mubr.bf16.mxu1 %v984_v11  ;;  %v2826_v11 = vld [vmem:[#allocation5 + $0x1e0] ss:$16 sps:$4 sm:$0xff]  }
 0x577   :  { %1018 = vmatmul.mubr.bf16.vlgmr.msra.gmra.mrb[20].mxu0 %v983_v10  ;;  %1059 = vmatmul.mubr.bf16.vlgmr.msra.gmra.mrb[20].mxu1 %v983_v10  ;;  %v2823_v10 = vld [vmem:[#allocation5 + $0x1ec] ss:$16 sps:$4 sm:$0xff]   ;;  %3223 = vst [vmem:[#allocation27_spill] sm:$0xff] %v2826_v11 }
 0x578   :  { %1098 = vmatpush1.bf16.msra.mxu0 %v2506_v57  ;;  %1139 = vmatpush1.bf16.msra.mxu1 %v2585_v58  ;;  %3222 = vst [vmem:[#allocation29_spill] sm:$0xff] %v2823_v10 }
 0x579   :  { %1099 = vmatprep.subr.bf16.mxu0 %v2510_v51  ;;  %1140 = vmatprep.subr.bf16.mxu1 %v2589_v56 }
 0x57c   :  { %1100 = vmatpush1.bf16.msra.mxu0 %v2514_v47  ;;  %1141 = vmatpush1.bf16.msra.mxu1 %v2593_v50 }
 0x57d   :  { %1101 = vmatprep.subr.bf16.mxu0 %v2596_v0  ;;  %1142 = vmatprep.subr.bf16.mxu1 %v2599_v41 }
 0x580   :  { %1102 = vmatpush1.bf16.msra.mxu0 %v2602_v60  ;;  %1143 = vmatpush1.bf16.msra.mxu1 %v2605_v54 }
 0x581   :  { %1103 = vmatprep.subr.bf16.mxu0 %v2608_v61  ;;  %1144 = vmatprep.subr.bf16.mxu1 %v2611_v43 }
 0x584   :  { %1104 = vmatpush1.bf16.msra.mxu0 %v2614_v62  ;;  %1145 = vmatpush1.bf16.msra.mxu1 %v2617_v55 }
 0x585   :  { %1105 = vmatprep.subr.bf16.mxu0 %v2620_v5  ;;  %1146 = vmatprep.subr.bf16.mxu1 %v2623_v21 }
 0x588   :  { %1106 = vmatpush1.bf16.msra.mxu0 %v2626_v22  ;;  %1147 = vmatpush1.bf16.msra.mxu1 %v2629_v23 }
 0x589   :  { %1107 = vmatprep.subr.bf16.mxu0 %v2632_v24  ;;  %1148 = vmatprep.subr.bf16.mxu1 %v2635_v25 }
 0x58c   :  { %1108 = vmatpush1.bf16.msra.mxu0 %v2638_v26  ;;  %1149 = vmatpush1.bf16.msra.mxu1 %v2641_v27 }
 0x58d   :  { %1109 = vmatprep.subr.bf16.mxu0 %v2644_v28  ;;  %1150 = vmatprep.subr.bf16.mxu1 %v2647_v29 }
 0x590   :  { %1110 = vmatpush1.bf16.msra.mxu0 %v2650_v30  ;;  %1151 = vmatpush1.bf16.msra.mxu1 %v2653_v31 }
 0x591   :  { %1111 = vmatprep.subr.bf16.mxu0 %v2656_v32  ;;  %1152 = vmatprep.subr.bf16.mxu1 %v2659_v33 }
 0x594   :  { %1112 = vmatpush1.bf16.msra.mxu0 %v2662_v34  ;;  %1153 = vmatpush1.bf16.msra.mxu1 %v2665_v35 }
 0x595   :  { %1113 = vmatprep.subr.bf16.mxu0 %v2668_v36  ;;  %1154 = vmatprep.subr.bf16.mxu1 %v2671_v37 }
 0x598   :  { %1114 = vmatpush1.bf16.msra.mxu0 %v2674_v38  ;;  %1155 = vmatpush1.bf16.msra.mxu1 %v2677_v39 }
 0x599   :  { %1115 = vmatprep.subr.bf16.mxu0 %v2680_v40  ;;  %1156 = vmatprep.subr.bf16.mxu1 %v2683_v42 }
 0x59c   :  { %1116 = vmatpush1.bf16.msra.mxu0 %v2686_v44  ;;  %1157 = vmatpush1.bf16.msra.mxu1 %v2689_v46 }
 0x59d   :  { %1117 = vmatprep.subr.bf16.mxu0 %v3208_v45  ;;  %1158 = vmatprep.subr.bf16.mxu1 %v2695_v52 }
 0x5a0   :  { %1118 = vmatpush1.bf16.msra.mxu0 %v2698_v63  ;;  %1159 = vmatpush1.bf16.msra.mxu1 %v2775_v12 }
 0x5a1   :  { %1119 = vmatprep.subr.bf16.mxu0 %v2702_v53  ;;  %1160 = vmatprep.subr.bf16.mxu1 %v2779_v13 }
 0x5a4   :  { %1120 = vmatpush1.bf16.msra.mxu0 %v2706_v59  ;;  %1161 = vmatpush1.bf16.msra.mxu1 %v2783_v14 }
 0x5a5   :  { %1121 = vmatprep.subr.bf16.mxu0 %v2710_v2  ;;  %1162 = vmatprep.subr.bf16.mxu1 %v2787_v15 }
 0x5a8   :  { %1122 = vmatpush1.bf16.msra.mxu0 %v2790_v16  ;;  %1163 = vmatpush1.bf16.msra.mxu1 %v2793_v17 }
 0x5a9   :  { %1123 = vmatprep.subr.bf16.mxu0 %v2796_v18  ;;  %1164 = vmatprep.subr.bf16.mxu1 %v2799_v48 }
 0x5ac   :  { %1124 = vmatpush1.bf16.msra.mxu0 %v2802_v3  ;;  %1165 = vmatpush1.bf16.msra.mxu1 %v2805_v7 }
 0x5ad   :  { %1125 = vmatprep.subr.bf16.mxu0 %v2808_v1  ;;  %1166 = vmatprep.subr.bf16.mxu1 %v2811_v4  ;;  %v2829_v4 = vld [vmem:[#allocation5 + $0x1e8] ss:$16 sps:$4 sm:$0xff]  }
 0x5ae   :  { %3224 = vst [vmem:[#allocation30_spill] sm:$0xff] %v2829_v4 }
 0x5b0   :  { %1126 = vmatpush1.bf16.msra.mxu0 %v2814_v6  ;;  %1167 = vmatpush1.bf16.msra.mxu1 %v2817_v9 }
 0x5b1   :  { %1127 = vmatprep.subr.bf16.mxu0 %v2820_v49  ;;  %1168 = vmatprep.subr.bf16.mxu1 %v2823_v10 }
 0x5b4   :  { %1128 = vmatpush1.bf16.msra.mxu0 %v2826_v11  ;;  %1169 = vmatpush1.bf16.msra.mxu1 %v2829_v4 }
 0x5b5   :  { %1209 = vmatprep.subr.bf16.mxu0 %v2574_v19  ;;  %1250 = vmatprep.subr.bf16.mxu1 %v2577_v20 }
 0x64a   :  { %v1019_v9 = vpop.f32.mrb[20].mxu0  ;;  %v1060_v6 = vpop.f32.mrb[20].mxu1 }
 0x64b   :  { %v1638_v1 = vmul.f32 -1.442695, %v1019_v9  ;;  %v1021_v49 = vpop.f32.mrb[21].mxu0  ;;  %v1062_v7 = vpop.f32.mrb[21].mxu1 }
 0x64c   :  { %v1639_v3 = vmul.f32 -1.442695, %v1021_v49  ;;  %v1023_v48 = vpop.f32.mrb[22].mxu0  ;;  %v1064_v10 = vpop.f32.mrb[22].mxu1  ;;  %v1640_v11 = vmul.f32 -1.442695, %v1062_v7 }
 0x64d   :  { %1836 = vpow2.f32 %v1638_v1  ;;  %v1024_v18 = vpop.f32.mrb[23].mxu0  ;;  %v1065_v17 = vpop.f32.mrb[23].mxu1  ;;  %v3231_v10 = vld [vmem:[#allocation22_spill] sm:$0xff] }
 0x64e   :  { %1838 = vpow2.f32 %v1639_v3  ;;  %v1094_v3 = vld [vmem:[#allocation2 + $0x30] sm:$0xff] }
 0x64f   :  { %1840 = vpow2.f32 %v1640_v11  ;;  %v3232_v11 = vld [vmem:[#allocation19_spill] sm:$0xff] }
 0x650   :  { %1842 = vtanh.f32 %v1060_v6  ;;  %v3230_v6 = vld [vmem:[#allocation16_spill] sm:$0xff] }
 0x657   :  { %v1837_v16 = vpop.eup %1836 }
 0x658   :  { %v1839_v4 = vpop.eup %1838  ;;  %v1070_v15 = vadd.f32 1.0, %v1837_v16 }
 0x659   :  { %v1076_v19 = vadd.f32 1.0, %v1839_v4  ;;  %v1841_v20 = vpop.eup %1840  ;;  %v1095_v4 = vpack.c.bf16 %v1094_v3, %v1094_v3  ;;  %v3238_v3 = vld [vmem:[#allocation24_spill] sm:$0xff] }
 0x65a   :  { %1844 = vrcp.f32 %v1070_v15  ;;  %v1843_v9 = vpop.eup %1842  ;;  %v1083_v14 = vadd.f32 1.0, %v1841_v20  ;;  %v3225_v20 = vld [vmem:[#allocation11_spill] sm:$0xff]  ;;  %v3229_v15 = vld [vmem:[#allocation21_spill] sm:$0xff] }
 0x65b   :  { %1846 = vrcp.f32 %v1076_v19 }
 0x65c   :  { %1848 = vrcp.f32 %v1083_v14  ;;  %v3228_v14 = vld [vmem:[#allocation15_spill] sm:$0xff] }
 0x664   :  { %v1845_v2 = vpop.eup %1844 }
 0x665   :  { %v1847_v49 = vpop.eup %1846  ;;  %v1087_v48 = vmul.f32 %v1845_v2, %v1843_v9  ;;  %v3226_v2 = vld [vmem:[#allocation18_spill] sm:$0xff]  ;;  %v3233_v9 = vld [vmem:[#allocation25_spill] sm:$0xff] }
 0x666   :  { %v1086_v1 = vmul.f32 %v1847_v49, %v2731_v8  ;;  %v1849_v17 = vpop.eup %1848  ;;  %v3227_v8 = vld [vmem:[#allocation12_spill] sm:$0xff] }
 0x667   :  { %v3234_v49 = vld [vmem:[#allocation20_spill] sm:$0xff] }
 0x668   :  { %v2835_v18 = vadd.f32 %v1087_v48, %v1086_v1  ;;  %v3235_v48 = vld [vmem:[#allocation26_spill] sm:$0xff]  ;;  %v3236_v1 = vld [vmem:[#allocation23_spill] sm:$0xff] }
 0x66a   :  { %1850 = vtanh.f32 %v2835_v18 }
 0x674   :  { %v1851_v16 = vpop.eup %1850 }
 0x675   :  { %v1090_v7 = vmul.f32 %v1851_v16, %v1849_v17  ;;  %v3237_v17 = vld [vmem:[#allocation28_spill] sm:$0xff]  ;;  %v3239_v16 = vld [vmem:[#allocation29_spill] sm:$0xff] }
 0x677   :  { %1092 = vst [vmem:[#allocation7 + $0x28] sm:$0xff] %v1090_v7  ;;  %v1096_v19 = vpack.c.bf16 %v1090_v7, %v1090_v7  ;;  %v3240_v7 = vld [vmem:[#allocation27_spill] sm:$0xff] }
 0x679   :  { %1129 = vmatprep.mubr.bf16.mxu0 %v1096_v19  ;;  %1170 = vmatprep.mubr.bf16.mxu1 %v1096_v19  ;;  %v3242_v19 = vld [vmem:[#allocation13_spill] sm:$0xff] }
 0x67a   :  { %1130 = vmatmul.mubr.bf16.vlgmr.msra.gmra.mrb[24].mxu0 %v1095_v4  ;;  %1171 = vmatmul.mubr.bf16.vlgmr.msra.gmra.mrb[24].mxu1 %v1095_v4  ;;  %v3241_v4 = vld [vmem:[#allocation30_spill] sm:$0xff] }
 0x67b   :  { %1210 = vmatpush1.bf16.msra.mxu0 %v2506_v57  ;;  %1251 = vmatpush1.bf16.msra.mxu1 %v2585_v58 }
 0x67c   :  { %1211 = vmatprep.subr.bf16.mxu0 %v2510_v51  ;;  %1252 = vmatprep.subr.bf16.mxu1 %v2589_v56 }
 0x67f   :  { %1212 = vmatpush1.bf16.msra.mxu0 %v2514_v47  ;;  %1253 = vmatpush1.bf16.msra.mxu1 %v2593_v50 }
 0x680   :  { %1213 = vmatprep.subr.bf16.mxu0 %v2596_v0  ;;  %1254 = vmatprep.subr.bf16.mxu1 %v2599_v41 }
 0x683   :  { %1214 = vmatpush1.bf16.msra.mxu0 %v2602_v60  ;;  %1255 = vmatpush1.bf16.msra.mxu1 %v2605_v54 }
 0x684   :  { %1215 = vmatprep.subr.bf16.mxu0 %v2608_v61  ;;  %1256 = vmatprep.subr.bf16.mxu1 %v2611_v43 }
 0x687   :  { %1216 = vmatpush1.bf16.msra.mxu0 %v2614_v62  ;;  %1257 = vmatpush1.bf16.msra.mxu1 %v2617_v55 }
 0x688   :  { %1217 = vmatprep.subr.bf16.mxu0 %v2620_v5  ;;  %1258 = vmatprep.subr.bf16.mxu1 %v2623_v21 }
 0x68b   :  { %1218 = vmatpush1.bf16.msra.mxu0 %v2626_v22  ;;  %1259 = vmatpush1.bf16.msra.mxu1 %v2629_v23 }
 0x68c   :  { %1219 = vmatprep.subr.bf16.mxu0 %v2632_v24  ;;  %1260 = vmatprep.subr.bf16.mxu1 %v2635_v25 }
 0x68f   :  { %1220 = vmatpush1.bf16.msra.mxu0 %v2638_v26  ;;  %1261 = vmatpush1.bf16.msra.mxu1 %v2641_v27 }
 0x690   :  { %1221 = vmatprep.subr.bf16.mxu0 %v2644_v28  ;;  %1262 = vmatprep.subr.bf16.mxu1 %v2647_v29 }
 0x693   :  { %1222 = vmatpush1.bf16.msra.mxu0 %v2650_v30  ;;  %1263 = vmatpush1.bf16.msra.mxu1 %v2653_v31 }
 0x694   :  { %1223 = vmatprep.subr.bf16.mxu0 %v2656_v32  ;;  %1264 = vmatprep.subr.bf16.mxu1 %v2659_v33 }
 0x697   :  { %1224 = vmatpush1.bf16.msra.mxu0 %v2662_v34  ;;  %1265 = vmatpush1.bf16.msra.mxu1 %v2665_v35 }
 0x698   :  { %1225 = vmatprep.subr.bf16.mxu0 %v2668_v36  ;;  %1266 = vmatprep.subr.bf16.mxu1 %v2671_v37 }
 0x69b   :  { %1226 = vmatpush1.bf16.msra.mxu0 %v2674_v38  ;;  %1267 = vmatpush1.bf16.msra.mxu1 %v2677_v39 }
 0x69c   :  { %1227 = vmatprep.subr.bf16.mxu0 %v2680_v40  ;;  %1268 = vmatprep.subr.bf16.mxu1 %v2683_v42 }
 0x69f   :  { %1228 = vmatpush1.bf16.msra.mxu0 %v2686_v44  ;;  %1269 = vmatpush1.bf16.msra.mxu1 %v2689_v46 }
 0x6a0   :  { %1229 = vmatprep.subr.bf16.mxu0 %v3208_v45  ;;  %1270 = vmatprep.subr.bf16.mxu1 %v2695_v52 }
 0x6a3   :  { %1230 = vmatpush1.bf16.msra.mxu0 %v2698_v63  ;;  %1271 = vmatpush1.bf16.msra.mxu1 %v2775_v12 }
 0x6a4   :  { %1231 = vmatprep.subr.bf16.mxu0 %v2702_v53  ;;  %1272 = vmatprep.subr.bf16.mxu1 %v2779_v13 }
 0x6a7   :  { %1232 = vmatpush1.bf16.msra.mxu0 %v2706_v59  ;;  %1273 = vmatpush1.bf16.msra.mxu1 %v3225_v20 }
 0x6a8   :  { %1233 = vmatprep.subr.bf16.mxu0 %v3226_v2  ;;  %1274 = vmatprep.subr.bf16.mxu1 %v3227_v8 }
 0x6ab   :  { %1234 = vmatpush1.bf16.msra.mxu0 %v3228_v14  ;;  %1275 = vmatpush1.bf16.msra.mxu1 %v3229_v15 }
 0x6ac   :  { %1235 = vmatprep.subr.bf16.mxu0 %v3230_v6  ;;  %1276 = vmatprep.subr.bf16.mxu1 %v3231_v10 }
 0x6af   :  { %1236 = vmatpush1.bf16.msra.mxu0 %v3232_v11  ;;  %1277 = vmatpush1.bf16.msra.mxu1 %v3233_v9  ;;  %v3243_v11 = vld [vmem:[#allocation17_spill] sm:$0xff] }
 0x6b0   :  { %1237 = vmatprep.subr.bf16.mxu0 %v3234_v49  ;;  %1278 = vmatprep.subr.bf16.mxu1 %v3235_v48 }
 0x6b3   :  { %1238 = vmatpush1.bf16.msra.mxu0 %v3236_v1  ;;  %1279 = vmatpush1.bf16.msra.mxu1 %v3237_v17 }
 0x6b4   :  { %1239 = vmatprep.subr.bf16.mxu0 %v3238_v3  ;;  %1280 = vmatprep.subr.bf16.mxu1 %v3239_v16 }
 0x6b7   :  { %1240 = vmatpush1.bf16.msra.mxu0 %v3240_v7  ;;  %1281 = vmatpush1.bf16.msra.mxu1 %v3241_v4 }
 0x6b8   :  { %1321 = vmatprep.subr.bf16.mxu0 %v3242_v19  ;;  %1362 = vmatprep.subr.bf16.mxu1 %v3243_v11 }
 0x74d   :  { %v1131_v9 = vpop.f32.mrb[24].mxu0  ;;  %v1172_v49 = vpop.f32.mrb[24].mxu1 }
 0x74e   :  { %v1641_v10 = vmul.f32 -1.442695, %v1131_v9  ;;  %v1133_v48 = vpop.f32.mrb[25].mxu0  ;;  %v1174_v6 = vpop.f32.mrb[25].mxu1 }
 0x74f   :  { %v1642_v1 = vmul.f32 -1.442695, %v1133_v48  ;;  %v1135_v15 = vpop.f32.mrb[26].mxu0  ;;  %v1176_v17 = vpop.f32.mrb[26].mxu1  ;;  %v1643_v16 = vmul.f32 -1.442695, %v1174_v6 }
 0x750   :  { %1852 = vpow2.f32 %v1641_v10  ;;  %v1136_v3 = vpop.f32.mrb[27].mxu0  ;;  %v1177_v14 = vpop.f32.mrb[27].mxu1  ;;  %v1206_v6 = vld [vmem:[#allocation2 + $0x38] sm:$0xff] }
 0x751   :  { %1854 = vpow2.f32 %v1642_v1  ;;  %v1207_v3 = vpack.c.bf16 %v1206_v6, %v1206_v6  ;;  %v3260_v6 = vld [vmem:[#allocation30_spill] sm:$0xff] }
 0x752   :  { %1856 = vpow2.f32 %v1643_v16  ;;  %v3251_v16 = vld [vmem:[#allocation19_spill] sm:$0xff] }
 0x753   :  { %1858 = vtanh.f32 %v1172_v49 }
 0x75a   :  { %v1853_v7 = vpop.eup %1852 }
 0x75b   :  { %v1855_v4 = vpop.eup %1854  ;;  %v1182_v8 = vadd.f32 1.0, %v1853_v7  ;;  %v3252_v7 = vld [vmem:[#allocation25_spill] sm:$0xff] }
 0x75c   :  { %v1188_v19 = vadd.f32 1.0, %v1855_v4  ;;  %v1857_v11 = vpop.eup %1856  ;;  %v3253_v4 = vld [vmem:[#allocation20_spill] sm:$0xff] }
 0x75d   :  { %1860 = vrcp.f32 %v1182_v8  ;;  %v1859_v9 = vpop.eup %1858  ;;  %v1195_v20 = vadd.f32 1.0, %v1857_v11  ;;  %v3250_v11 = vld [vmem:[#allocation22_spill] sm:$0xff] }
 0x75e   :  { %1862 = vrcp.f32 %v1188_v19  ;;  %v3254_v19 = vld [vmem:[#allocation26_spill] sm:$0xff] }
 0x75f   :  { %1864 = vrcp.f32 %v1195_v20  ;;  %v3248_v20 = vld [vmem:[#allocation21_spill] sm:$0xff] }
 0x767   :  { %v1861_v2 = vpop.eup %1860 }
 0x768   :  { %v1863_v48 = vpop.eup %1862  ;;  %v1199_v15 = vmul.f32 %v1861_v2, %v1859_v9  ;;  %v3249_v2 = vld [vmem:[#allocation16_spill] sm:$0xff]  ;;  %v3255_v9 = vld [vmem:[#allocation23_spill] sm:$0xff] }
 0x769   :  { %v1198_v10 = vmul.f32 %v1863_v48, %v2835_v18  ;;  %v1865_v14 = vpop.eup %1864  ;;  %v3247_v18 = vld [vmem:[#allocation15_spill] sm:$0xff]  ;;  %v3256_v48 = vld [vmem:[#allocation28_spill] sm:$0xff] }
 0x76b   :  { %v2903_v17 = vadd.f32 %v1199_v15, %v1198_v10  ;;  %v3257_v15 = vld [vmem:[#allocation24_spill] sm:$0xff]  ;;  %v3258_v10 = vld [vmem:[#allocation29_spill] sm:$0xff] }
 0x76d   :  { %1866 = vtanh.f32 %v2903_v17 }
 0x777   :  { %v1867_v1 = vpop.eup %1866 }
 0x778   :  { %v1202_v49 = vmul.f32 %v1867_v1, %v1865_v14  ;;  %v3259_v14 = vld [vmem:[#allocation27_spill] sm:$0xff]  ;;  %v3261_v1 = vld [vmem:[#allocation13_spill] sm:$0xff] }
 0x77a   :  { %1204 = vst [vmem:[#allocation7 + $0x30] sm:$0xff] %v1202_v49  ;;  %v1208_v8 = vpack.c.bf16 %v1202_v49, %v1202_v49  ;;  %v3262_v49 = vld [vmem:[#allocation17_spill] sm:$0xff] }
 0x77c   :  { %1241 = vmatprep.mubr.bf16.mxu0 %v1208_v8  ;;  %1282 = vmatprep.mubr.bf16.mxu1 %v1208_v8 }
 0x77d   :  { %1242 = vmatmul.mubr.bf16.vlgmr.msra.gmra.mrb[28].mxu0 %v1207_v3  ;;  %1283 = vmatmul.mubr.bf16.vlgmr.msra.gmra.mrb[28].mxu1 %v1207_v3 }
 0x77e   :  { %1322 = vmatpush1.bf16.msra.mxu0 %v2506_v57  ;;  %1363 = vmatpush1.bf16.msra.mxu1 %v2585_v58  ;;  %v3244_v57 = vld [vmem:[#allocation11_spill] sm:$0xff] }
 0x77f   :  { %1323 = vmatprep.subr.bf16.mxu0 %v2510_v51  ;;  %1364 = vmatprep.subr.bf16.mxu1 %v2589_v56  ;;  %v3245_v51 = vld [vmem:[#allocation18_spill] sm:$0xff] }
 0x782   :  { %1324 = vmatpush1.bf16.msra.mxu0 %v2514_v47  ;;  %1365 = vmatpush1.bf16.msra.mxu1 %v2593_v50  ;;  %v3246_v47 = vld [vmem:[#allocation12_spill] sm:$0xff] }
 0x783   :  { %1325 = vmatprep.subr.bf16.mxu0 %v2596_v0  ;;  %1366 = vmatprep.subr.bf16.mxu1 %v2599_v41 }
 0x786   :  { %1326 = vmatpush1.bf16.msra.mxu0 %v2602_v60  ;;  %1367 = vmatpush1.bf16.msra.mxu1 %v2605_v54 }
 0x787   :  { %1327 = vmatprep.subr.bf16.mxu0 %v2608_v61  ;;  %1368 = vmatprep.subr.bf16.mxu1 %v2611_v43 }
 0x78a   :  { %1328 = vmatpush1.bf16.msra.mxu0 %v2614_v62  ;;  %1369 = vmatpush1.bf16.msra.mxu1 %v2617_v55 }
 0x78b   :  { %1329 = vmatprep.subr.bf16.mxu0 %v2620_v5  ;;  %1370 = vmatprep.subr.bf16.mxu1 %v2623_v21 }
 0x78e   :  { %1330 = vmatpush1.bf16.msra.mxu0 %v2626_v22  ;;  %1371 = vmatpush1.bf16.msra.mxu1 %v2629_v23 }
 0x78f   :  { %1331 = vmatprep.subr.bf16.mxu0 %v2632_v24  ;;  %1372 = vmatprep.subr.bf16.mxu1 %v2635_v25 }
 0x792   :  { %1332 = vmatpush1.bf16.msra.mxu0 %v2638_v26  ;;  %1373 = vmatpush1.bf16.msra.mxu1 %v2641_v27 }
 0x793   :  { %1333 = vmatprep.subr.bf16.mxu0 %v2644_v28  ;;  %1374 = vmatprep.subr.bf16.mxu1 %v2647_v29 }
 0x796   :  { %1334 = vmatpush1.bf16.msra.mxu0 %v2650_v30  ;;  %1375 = vmatpush1.bf16.msra.mxu1 %v2653_v31 }
 0x797   :  { %1335 = vmatprep.subr.bf16.mxu0 %v2656_v32  ;;  %1376 = vmatprep.subr.bf16.mxu1 %v2659_v33 }
 0x79a   :  { %1336 = vmatpush1.bf16.msra.mxu0 %v2662_v34  ;;  %1377 = vmatpush1.bf16.msra.mxu1 %v2665_v35 }
 0x79b   :  { %1337 = vmatprep.subr.bf16.mxu0 %v2668_v36  ;;  %1378 = vmatprep.subr.bf16.mxu1 %v2671_v37 }
 0x79e   :  { %1338 = vmatpush1.bf16.msra.mxu0 %v2674_v38  ;;  %1379 = vmatpush1.bf16.msra.mxu1 %v2677_v39 }
 0x79f   :  { %1339 = vmatprep.subr.bf16.mxu0 %v2680_v40  ;;  %1380 = vmatprep.subr.bf16.mxu1 %v2683_v42 }
 0x7a2   :  { %1340 = vmatpush1.bf16.msra.mxu0 %v2686_v44  ;;  %1381 = vmatpush1.bf16.msra.mxu1 %v2689_v46 }
 0x7a3   :  { %1341 = vmatprep.subr.bf16.mxu0 %v3208_v45  ;;  %1382 = vmatprep.subr.bf16.mxu1 %v2695_v52 }
 0x7a6   :  { %1342 = vmatpush1.bf16.msra.mxu0 %v2698_v63  ;;  %1383 = vmatpush1.bf16.msra.mxu1 %v2775_v12 }
 0x7a7   :  { %1343 = vmatprep.subr.bf16.mxu0 %v2702_v53  ;;  %1384 = vmatprep.subr.bf16.mxu1 %v2779_v13 }
 0x7aa   :  { %1344 = vmatpush1.bf16.msra.mxu0 %v2706_v59  ;;  %1385 = vmatpush1.bf16.msra.mxu1 %v3244_v57 }
 0x7ab   :  { %1345 = vmatprep.subr.bf16.mxu0 %v3245_v51  ;;  %1386 = vmatprep.subr.bf16.mxu1 %v3246_v47 }
 0x7ae   :  { %1346 = vmatpush1.bf16.msra.mxu0 %v3247_v18  ;;  %1387 = vmatpush1.bf16.msra.mxu1 %v3248_v20 }
 0x7af   :  { %1347 = vmatprep.subr.bf16.mxu0 %v3249_v2  ;;  %1388 = vmatprep.subr.bf16.mxu1 %v3250_v11 }
 0x7b2   :  { %1348 = vmatpush1.bf16.msra.mxu0 %v3251_v16  ;;  %1389 = vmatpush1.bf16.msra.mxu1 %v3252_v7 }
 0x7b3   :  { %1349 = vmatprep.subr.bf16.mxu0 %v3253_v4  ;;  %1390 = vmatprep.subr.bf16.mxu1 %v3254_v19 }
 0x7b6   :  { %1350 = vmatpush1.bf16.msra.mxu0 %v3255_v9  ;;  %1391 = vmatpush1.bf16.msra.mxu1 %v3256_v48 }
 0x7b7   :  { %1351 = vmatprep.subr.bf16.mxu0 %v3257_v15  ;;  %1392 = vmatprep.subr.bf16.mxu1 %v3258_v10 }
 0x7ba   :  { %1352 = vmatpush1.bf16.msra.mxu0 %v3259_v14  ;;  %1393 = vmatpush1.bf16.msra.mxu1 %v3260_v6 }
 0x7bb   :  { %1433 = vmatprep.subr.bf16.mxu0 %v3261_v1  ;;  %1474 = vmatprep.subr.bf16.mxu1 %v3262_v49 }
 0x850   :  { %v1243_v3 = vpop.f32.mrb[28].mxu0  ;;  %v1284_v8 = vpop.f32.mrb[28].mxu1 }
 0x851   :  { %v1644_v4 = vmul.f32 -1.442695, %v1243_v3  ;;  %v1245_v19 = vpop.f32.mrb[29].mxu0  ;;  %v1286_v7 = vpop.f32.mrb[29].mxu1 }
 0x852   :  { %v1645_v9 = vmul.f32 -1.442695, %v1245_v19  ;;  %v1247_v16 = vpop.f32.mrb[30].mxu0  ;;  %v1288_v48 = vpop.f32.mrb[30].mxu1  ;;  %v1646_v10 = vmul.f32 -1.442695, %v1286_v7 }
 0x853   :  { %1868 = vpow2.f32 %v1644_v4  ;;  %v1248_v15 = vpop.f32.mrb[31].mxu0  ;;  %v1289_v11 = vpop.f32.mrb[31].mxu1  ;;  %v1318_v7 = vld [vmem:[#allocation2 + $0x40] sm:$0xff] }
 0x854   :  { %1870 = vpow2.f32 %v1645_v9 }
 0x855   :  { %1872 = vpow2.f32 %v1646_v10  ;;  %v1319_v10 = vpack.c.bf16 %v1318_v7, %v1318_v7 }
 0x856   :  { %1874 = vtanh.f32 %v1284_v8 }
 0x85d   :  { %v1869_v14 = vpop.eup %1868 }
 0x85e   :  { %v1871_v6 = vpop.eup %1870  ;;  %v1294_v2 = vadd.f32 1.0, %v1869_v14  ;;  %v1980_v14 = vld [vmem:[#allocation5] ss:$16 sps:$4 sm:$0xff]  }
 0x85f   :  { %v1300_v1 = vadd.f32 1.0, %v1871_v6  ;;  %v1873_v49 = vpop.eup %1872 }
 0x860   :  { %1876 = vrcp.f32 %v1294_v2  ;;  %v1875_v3 = vpop.eup %1874  ;;  %v1307_v18 = vadd.f32 1.0, %v1873_v49 }
 0x861   :  { %1878 = vrcp.f32 %v1300_v1 }
 0x862   :  { %1880 = vrcp.f32 %v1307_v18  ;;  %v1982_v18 = vld [vmem:[#allocation5 + $0x20] ss:$16 sps:$4 sm:$0xff]  }
 0x86a   :  { %v1877_v20 = vpop.eup %1876 }
 0x86b   :  { %v1879_v19 = vpop.eup %1878  ;;  %v1311_v16 = vmul.f32 %v1877_v20, %v1875_v3 }
 0x86c   :  { %v1310_v4 = vmul.f32 %v1879_v19, %v2903_v17  ;;  %v1881_v11 = vpop.eup %1880  ;;  %v1981_v17 = vld [vmem:[#allocation5 + $0x24] ss:$16 sps:$4 sm:$0xff]  }
 0x86e   :  { %v2971_v48 = vadd.f32 %v1311_v16, %v1310_v4 }
 0x870   :  { %1882 = vtanh.f32 %v2971_v48 }
 0x87a   :  { %v1883_v9 = vpop.eup %1882 }
 0x87b   :  { %v1314_v15 = vmul.f32 %v1883_v9, %v1881_v11 }
 0x87d   :  { %1316 = vst [vmem:[#allocation7 + $0x38] sm:$0xff] %v1314_v15  ;;  %v1320_v2 = vpack.c.bf16 %v1314_v15, %v1314_v15 }
 0x87f   :  { %1353 = vmatprep.mubr.bf16.mxu0 %v1320_v2  ;;  %1394 = vmatprep.mubr.bf16.mxu1 %v1320_v2 }
 0x880   :  { %1354 = vmatmul.mubr.bf16.vlgmr.msra.gmra.mrb[32].mxu0 %v1319_v10  ;;  %1395 = vmatmul.mubr.bf16.vlgmr.msra.gmra.mrb[32].mxu1 %v1319_v10 }
 0x881   :  { %1434 = vmatpush1.bf16.msra.mxu0 %v1980_v14  ;;  %1475 = vmatpush1.bf16.msra.mxu1 %v2585_v58  ;;  %v3263_v58 = vld [vmem:[#allocation15_spill] sm:$0xff] }
 0x882   :  { %1435 = vmatprep.subr.bf16.mxu0 %v1981_v17  ;;  %1476 = vmatprep.subr.bf16.mxu1 %v2589_v56  ;;  %v3264_v56 = vld [vmem:[#allocation21_spill] sm:$0xff] }
 0x885   :  { %1436 = vmatpush1.bf16.msra.mxu0 %v1982_v18  ;;  %1477 = vmatpush1.bf16.msra.mxu1 %v2593_v50  ;;  %v3265_v50 = vld [vmem:[#allocation16_spill] sm:$0xff] }
 0x886   :  { %1437 = vmatprep.subr.bf16.mxu0 %v2596_v0  ;;  %1478 = vmatprep.subr.bf16.mxu1 %v2599_v41  ;;  %v3266_v0 = vld [vmem:[#allocation22_spill] sm:$0xff]  ;;  %v3267_v41 = vld [vmem:[#allocation19_spill] sm:$0xff] }
 0x889   :  { %1438 = vmatpush1.bf16.msra.mxu0 %v2602_v60  ;;  %1479 = vmatpush1.bf16.msra.mxu1 %v2605_v54  ;;  %v3268_v60 = vld [vmem:[#allocation25_spill] sm:$0xff]  ;;  %v3269_v54 = vld [vmem:[#allocation20_spill] sm:$0xff] }
 0x88a   :  { %1439 = vmatprep.subr.bf16.mxu0 %v2608_v61  ;;  %1480 = vmatprep.subr.bf16.mxu1 %v2611_v43  ;;  %v3270_v61 = vld [vmem:[#allocation26_spill] sm:$0xff]  ;;  %v3271_v43 = vld [vmem:[#allocation23_spill] sm:$0xff] }
 0x88d   :  { %1440 = vmatpush1.bf16.msra.mxu0 %v2614_v62  ;;  %1481 = vmatpush1.bf16.msra.mxu1 %v2617_v55  ;;  %v3272_v62 = vld [vmem:[#allocation28_spill] sm:$0xff] }
 0x88e   :  { %1441 = vmatprep.subr.bf16.mxu0 %v2620_v5  ;;  %1482 = vmatprep.subr.bf16.mxu1 %v2623_v21  ;;  %v3273_v55 = vld [vmem:[#allocation24_spill] sm:$0xff]  ;;  %v3274_v5 = vld [vmem:[#allocation29_spill] sm:$0xff]  ;;  %v3275_v21 = vld [vmem:[#allocation27_spill] sm:$0xff] }
 0x891   :  { %1442 = vmatpush1.bf16.msra.mxu0 %v2626_v22  ;;  %1483 = vmatpush1.bf16.msra.mxu1 %v2629_v23  ;;  %v3276_v22 = vld [vmem:[#allocation30_spill] sm:$0xff] }
 0x892   :  { %1443 = vmatprep.subr.bf16.mxu0 %v2632_v24  ;;  %1484 = vmatprep.subr.bf16.mxu1 %v2635_v25 }
 0x895   :  { %1444 = vmatpush1.bf16.msra.mxu0 %v2638_v26  ;;  %1485 = vmatpush1.bf16.msra.mxu1 %v2641_v27 }
 0x896   :  { %1445 = vmatprep.subr.bf16.mxu0 %v2644_v28  ;;  %1486 = vmatprep.subr.bf16.mxu1 %v2647_v29 }
 0x899   :  { %1446 = vmatpush1.bf16.msra.mxu0 %v2650_v30  ;;  %1487 = vmatpush1.bf16.msra.mxu1 %v2653_v31 }
 0x89a   :  { %1447 = vmatprep.subr.bf16.mxu0 %v2656_v32  ;;  %1488 = vmatprep.subr.bf16.mxu1 %v2659_v33 }
 0x89d   :  { %1448 = vmatpush1.bf16.msra.mxu0 %v2662_v34  ;;  %1489 = vmatpush1.bf16.msra.mxu1 %v2665_v35 }
 0x89e   :  { %1449 = vmatprep.subr.bf16.mxu0 %v2668_v36  ;;  %1490 = vmatprep.subr.bf16.mxu1 %v2671_v37 }
 0x8a1   :  { %1450 = vmatpush1.bf16.msra.mxu0 %v2674_v38  ;;  %1491 = vmatpush1.bf16.msra.mxu1 %v2677_v39 }
 0x8a2   :  { %1451 = vmatprep.subr.bf16.mxu0 %v2680_v40  ;;  %1492 = vmatprep.subr.bf16.mxu1 %v2683_v42 }
 0x8a5   :  { %1452 = vmatpush1.bf16.msra.mxu0 %v2686_v44  ;;  %1493 = vmatpush1.bf16.msra.mxu1 %v2689_v46 }
 0x8a6   :  { %1453 = vmatprep.subr.bf16.mxu0 %v3208_v45  ;;  %1494 = vmatprep.subr.bf16.mxu1 %v2695_v52 }
 0x8a9   :  { %1454 = vmatpush1.bf16.msra.mxu0 %v2698_v63  ;;  %1495 = vmatpush1.bf16.msra.mxu1 %v2775_v12 }
 0x8aa   :  { %1455 = vmatprep.subr.bf16.mxu0 %v2702_v53  ;;  %1496 = vmatprep.subr.bf16.mxu1 %v2779_v13 }
 0x8ad   :  { %1456 = vmatpush1.bf16.msra.mxu0 %v2706_v59  ;;  %1497 = vmatpush1.bf16.msra.mxu1 %v3244_v57  ;;  %v1430_v59 = vld [vmem:[#allocation2 + $0x48] sm:$0xff] }
 0x8ae   :  { %1457 = vmatprep.subr.bf16.mxu0 %v3245_v51  ;;  %1498 = vmatprep.subr.bf16.mxu1 %v3246_v47  ;;  %v1431_v13 = vpack.c.bf16 %v1430_v59, %v1430_v59 }
 0x8b1   :  { %1458 = vmatpush1.bf16.msra.mxu0 %v3263_v58  ;;  %1499 = vmatpush1.bf16.msra.mxu1 %v3264_v56 }
 0x8b2   :  { %1459 = vmatprep.subr.bf16.mxu0 %v3265_v50  ;;  %1500 = vmatprep.subr.bf16.mxu1 %v3266_v0 }
 0x8b5   :  { %1460 = vmatpush1.bf16.msra.mxu0 %v3267_v41  ;;  %1501 = vmatpush1.bf16.msra.mxu1 %v3268_v60 }
 0x8b6   :  { %1461 = vmatprep.subr.bf16.mxu0 %v3269_v54  ;;  %1502 = vmatprep.subr.bf16.mxu1 %v3270_v61 }
 0x8b9   :  { %1462 = vmatpush1.bf16.msra.mxu0 %v3271_v43  ;;  %1503 = vmatpush1.bf16.msra.mxu1 %v3272_v62 }
 0x8ba   :  { %1463 = vmatprep.subr.bf16.mxu0 %v3273_v55  ;;  %1504 = vmatprep.subr.bf16.mxu1 %v3274_v5 }
 0x8bd   :  { %1464 = vmatpush1.bf16.msra.mxu0 %v3275_v21  ;;  %1505 = vmatpush1.bf16.msra.mxu1 %v3276_v22 }
 0x953   :  { %v1355_v23 = vpop.f32.mrb[32].mxu0  ;;  %v1396_v24 = vpop.f32.mrb[32].mxu1 }
 0x954   :  { %v1647_v25 = vmul.f32 -1.442695, %v1355_v23  ;;  %v1357_v26 = vpop.f32.mrb[33].mxu0  ;;  %v1398_v27 = vpop.f32.mrb[33].mxu1 }
 0x955   :  { %v1648_v28 = vmul.f32 -1.442695, %v1357_v26  ;;  %v1359_v29 = vpop.f32.mrb[34].mxu0  ;;  %v1400_v30 = vpop.f32.mrb[34].mxu1  ;;  %v1649_v33 = vmul.f32 -1.442695, %v1398_v27 }
 0x956   :  { %1884 = vpow2.f32 %v1647_v25  ;;  %v1360_v31 = vpop.f32.mrb[35].mxu0  ;;  %v1401_v32 = vpop.f32.mrb[35].mxu1 }
 0x957   :  { %1886 = vpow2.f32 %v1648_v28 }
 0x958   :  { %1888 = vpow2.f32 %v1649_v33 }
 0x959   :  { %1890 = vtanh.f32 %v1396_v24 }
 0x960   :  { %v1885_v34 = vpop.eup %1884 }
 0x961   :  { %v1887_v35 = vpop.eup %1886  ;;  %v1406_v36 = vadd.f32 1.0, %v1885_v34 }
 0x962   :  { %v1412_v37 = vadd.f32 1.0, %v1887_v35  ;;  %v1889_v38 = vpop.eup %1888 }
 0x963   :  { %1892 = vrcp.f32 %v1406_v36  ;;  %v1891_v39 = vpop.eup %1890  ;;  %v1419_v42 = vadd.f32 1.0, %v1889_v38 }
 0x964   :  { %1894 = vrcp.f32 %v1412_v37 }
 0x965   :  { %1896 = vrcp.f32 %v1419_v42 }
 0x96d   :  { %v1893_v40 = vpop.eup %1892 }
 0x96e   :  { %v1895_v44 = vpop.eup %1894  ;;  %v1423_v46 = vmul.f32 %v1893_v40, %v1891_v39 }
 0x96f   :  { %v1422_v52 = vmul.f32 %v1895_v44, %v2971_v48  ;;  %v1897_v53 = vpop.eup %1896 }
 0x971   :  { %v1424_v63 = vadd.f32 %v1423_v46, %v1422_v52 }
 0x973   :  { %1898 = vtanh.f32 %v1424_v63 }
 0x97d   :  { %v1899_v45 = vpop.eup %1898 }
 0x97e   :  { %v1426_v12 = vmul.f32 %v1899_v45, %v1897_v53 }
 0x980   :  { %1428 = vst [vmem:[#allocation7 + $0x40] sm:$0xff] %v1426_v12  ;;  %v1432_v57 = vpack.c.bf16 %v1426_v12, %v1426_v12 }
 0x982   :  { %1465 = vmatprep.mubr.bf16.mxu0 %v1432_v57  ;;  %1506 = vmatprep.mubr.bf16.mxu1 %v1432_v57 }
 0x983   :  { %1466 = vmatmul.mubr.bf16.vlgmr.msra.gmra.mrb[36].mxu0 %v1431_v13  ;;  %1507 = vmatmul.mubr.bf16.vlgmr.msra.gmra.mrb[36].mxu1 %v1431_v13 }
 0xa56   :  { %v1467_v51 = vpop.f32.mrb[36].mxu0  ;;  %v1508_v47 = vpop.f32.mrb[36].mxu1 }
 0xa57   :  { %v1650_v20 = vmul.f32 -1.442695, %v1467_v51  ;;  %v1469_v6 = vpop.f32.mrb[37].mxu0  ;;  %v1510_v8 = vpop.f32.mrb[37].mxu1 }
 0xa58   :  { %v1651_v1 = vmul.f32 -1.442695, %v1469_v6  ;;  %v1471_v49 = vpop.f32.mrb[38].mxu0  ;;  %v1512_v3 = vpop.f32.mrb[38].mxu1  ;;  %v1652_v4 = vmul.f32 -1.442695, %v1510_v8 }
 0xa59   :  { %1900 = vpow2.f32 %v1650_v20  ;;  %v1472_v19 = vpop.f32.mrb[39].mxu0  ;;  %v1513_v16 = vpop.f32.mrb[39].mxu1 }
 0xa5a   :  { %1902 = vpow2.f32 %v1651_v1 }
 0xa5b   :  { %1904 = vpow2.f32 %v1652_v4 }
 0xa5c   :  { %1906 = vtanh.f32 %v1508_v47 }
 0xa63   :  { %v1901_v48 = vpop.eup %1900 }
 0xa64   :  { %v1903_v11 = vpop.eup %1902  ;;  %v1518_v7 = vadd.f32 1.0, %v1901_v48 }
 0xa65   :  { %v1524_v9 = vadd.f32 1.0, %v1903_v11  ;;  %v1905_v15 = vpop.eup %1904 }
 0xa66   :  { %1908 = vrcp.f32 %v1518_v7  ;;  %v1907_v10 = vpop.eup %1906  ;;  %v1531_v14 = vadd.f32 1.0, %v1905_v15 }
 0xa67   :  { %1910 = vrcp.f32 %v1524_v9 }
 0xa68   :  { %1912 = vrcp.f32 %v1531_v14 }
 0xa70   :  { %v1909_v2 = vpop.eup %1908 }
 0xa71   :  { %v1911_v17 = vpop.eup %1910  ;;  %v1535_v18 = vmul.f32 %v1909_v2, %v1907_v10 }
 0xa72   :  { %v1534_v58 = vmul.f32 %v1911_v17, %v1424_v63  ;;  %v1913_v50 = vpop.eup %1912 }
 0xa74   :  { %v1536_v56 = vadd.f32 %v1535_v18, %v1534_v58 }
 0xa76   :  { %1914 = vtanh.f32 %v1536_v56 }
 0xa80   :  { %v1915_v0 = vpop.eup %1914 }
 0xa81   :  { %v1538_v41 = vmul.f32 %v1915_v0, %v1913_v50 }
 0xa83   :  { %1540 = vst [vmem:[#allocation7 + $0x48] sm:$0xff] %v1538_v41 }
 0xa84   :  { %2038 = shalt.err (!%p2035_p6)
}
 0xa85   :  { %s2039_s12 = scalar_lea.hbm %s3051_s2, 1280 }
 0xa86   :  { %p2040_p7 = scmp.ne.s32.totalorder %s3051_s2, %s2039_s12  ;;  %p2043_p8 = scmp.lt.u32.totalorder %s2039_s12, %s3051_s2 }
 0xa88   :  { %p2045_p9 = pnand %p2043_p8, %p2040_p7 }
 0xa8a   :  { %2048 = shalt.err (!%p2045_p9)
}
 0xa8b   :  { %1552 = dma.vmem_to_hbm [thread:$0]  %s1547_s8, 1280, %s3051_s2, [#allocation4], %s2056_s19, %s2056_s19, %s2057_s20  }
 0xa8c   :  { %2053 = dma.done.wait [#allocation4], 1280  }
 0xa8d   :  { %2054 = vsyncadd [#allocation4], 4294966016 }
 0xa8e   :  { %1556 = vsyncpa [#allocation3], 1 }
 0xa8f   :  { %1557 = vsyncpa [#allocation6], 1 }
 0xa90   :  { %1558 = vsyncpa [#allocation4], 1 }

</bundles_post_ra>
